<compile_context>
chip_gen: v6e
topology: v6e:2x2x1
jax: 0.10.0
libtpu: 0.0.40
codegen_flags: <defaults>
</compile_context>

<pallas_src>
import jax
import jax.numpy as jnp
from jax import lax
from jax.experimental import pallas as pl
from jax.experimental.pallas import tpu as pltpu


def spam_kernel(x_ref,      # (T*Bp, E)  embedded tokens, row = t*Bp + b
                wih1_ref,   # (E, 4H)    lstm1 input->gates
                whh1_ref,   # (H, 4H)    lstm1 hidden->gates
                b1_ref,     # (1, 4H)    lstm1 combined bias (b_ih + b_hh)
                w2_ref,     # (2H, 4H)   lstm2 stacked [input->gates; hidden->gates]
                b2_ref,     # (1, 4H)    lstm2 combined bias
                wlin_ref,   # (H, O)     final linear weight
                blin_ref,   # (1, O)     final linear bias
                out_ref):   # (Bp, O)    sigmoid probabilities (padded batch)
    Bp = out_ref.shape[0]
    T = x_ref.shape[0] // Bp
    H = whh1_ref.shape[0]
    G = 4 * H

    whh1 = whh1_ref[...]
    w2 = w2_ref[...]

    # (1) Hoisted layer-1 input projection for all timesteps in one batched
    #     MXU matmul; layer-1 bias folded in once here.
    xg = (jnp.dot(x_ref[...], wih1_ref[...],
                  preferred_element_type=jnp.float32) + b1_ref[...])  # (T*Bp, 4H)

    # (2) Hoist the layer-2 bias broadcast out of the unrolled recurrence.
    b2b = jnp.broadcast_to(b2_ref[...], (Bp, G))

    def gates_to_hc(gates, c):
        # (3) Full-(Bp, 4H)-vreg activations (one sigmoid + one tanh EUP push),
        #     then static 32-lane slices of already-activated data.
        #     PyTorch gate ordering: i, f, g, o.
        sg = jax.nn.sigmoid(gates)
        th = jnp.tanh(gates)
        i_g = sg[:, 0 * H:1 * H]
        f_g = sg[:, 1 * H:2 * H]
        g_g = th[:, 2 * H:3 * H]
        o_g = sg[:, 3 * H:4 * H]
        c_new = f_g * c + i_g * g_g
        h_new = o_g * jnp.tanh(c_new)
        return h_new, c_new

    h1 = c1 = h2 = c2 = jnp.zeros((Bp, H), jnp.float32)

    # (4) Static full unroll of the T-step recurrence.
    for t in range(T):
        # Layer 1: only the hidden->gates matmul remains on the critical path.
        g1 = xg[t * Bp:(t + 1) * Bp, :] + jnp.dot(
            h1, whh1, preferred_element_type=jnp.float32)
        h1, c1 = gates_to_hc(g1, c1)
        # Layer 2: single fused matmul on [x=h1, h=h2] with stacked weights.
        g2 = jnp.dot(jnp.concatenate([h1, h2], axis=1), w2,
                     preferred_element_type=jnp.float32) + b2b
        h2, c2 = gates_to_hc(g2, c2)

    logits = (jnp.dot(h2, wlin_ref[...], preferred_element_type=jnp.float32)
              + blin_ref[...])
    out_ref[...] = jax.nn.sigmoid(logits)


def make_params(key, mak_tokens, embedding_dim, hidden_dim, target_size):
    ks = jax.random.split(key, 10)
    u = lambda k, shape, s: jax.random.uniform(k, shape, jnp.float32, -s, s)
    s1 = 1.0 / jnp.sqrt(hidden_dim)
    return dict(
        embedding=jax.random.normal(ks[0], (mak_tokens, embedding_dim), jnp.float32),
        # PyTorch layout: weight_ih (4H, in), weight_hh (4H, H), biases (4H,)
        w_ih1=u(ks[1], (4 * hidden_dim, embedding_dim), s1),
        w_hh1=u(ks[2], (4 * hidden_dim, hidden_dim), s1),
        b_ih1=u(ks[3], (4 * hidden_dim,), s1),
        b_hh1=u(ks[4], (4 * hidden_dim,), s1),
        w_ih2=u(ks[5], (4 * hidden_dim, hidden_dim), s1),
        w_hh2=u(ks[6], (4 * hidden_dim, hidden_dim), s1),
        b_ih2=u(ks[7], (4 * hidden_dim,), s1),
        b_hh2=u(ks[8], (4 * hidden_dim,), s1),
        w_lin=u(ks[9], (target_size, hidden_dim), s1),
        b_lin=jnp.zeros((target_size,), jnp.float32),
    )


def spam_forward(tokens, params, target_size):
    B, T = tokens.shape
    E = params["w_ih1"].shape[1]

    # Pad batch up to full sublanes (8); padded rows are zero and independent.
    Bp = max(8, ((B + 7) // 8) * 8)

    # Embedding gather (glue) + time-major flatten: row index = t*Bp + b.
    emb = jnp.take(params["embedding"], tokens, axis=0)            # (B, T, E)
    x = jnp.transpose(emb, (1, 0, 2)).astype(jnp.float32)           # (T, B, E)
    x = jnp.pad(x, ((0, 0), (0, Bp - B), (0, 0)))                   # (T, Bp, E)
    x2d = x.reshape(T * Bp, E)                                      # (T*Bp, E)

    wih1 = params["w_ih1"].T.astype(jnp.float32)                    # (E, 4H)
    whh1 = params["w_hh1"].T.astype(jnp.float32)                    # (H, 4H)
    b1 = (params["b_ih1"] + params["b_hh1"])[None, :].astype(jnp.float32)
    w2 = jnp.concatenate([params["w_ih2"].T, params["w_hh2"].T],
                         axis=0).astype(jnp.float32)                # (2H, 4H)
    b2 = (params["b_ih2"] + params["b_hh2"])[None, :].astype(jnp.float32)
    wlin = params["w_lin"].T.astype(jnp.float32)                    # (H, O)
    blin = params["b_lin"][None, :].astype(jnp.float32)             # (1, O)

    # Everything resident in VMEM: whole-array blocks, grid=().
    vmem_spec = lambda: pl.BlockSpec(memory_space=pltpu.MemorySpace.VMEM)
    out = pl.pallas_call(
        spam_kernel,
        out_shape=jax.ShapeDtypeStruct((Bp, target_size), jnp.float32),
        in_specs=[vmem_spec() for _ in range(8)],
        out_specs=vmem_spec(),
    )(x2d, wih1, whh1, b1, w2, b2, wlin, blin)
    return out[:B]


def spam_reference(tokens, params, target_size):
    """Pure-JAX reference matching PyTorch LSTM semantics (eval mode)."""
    emb = jnp.take(params["embedding"], tokens, axis=0)
    B = tokens.shape[0]
    H = params["w_hh1"].shape[1]

    def cell(x_t, h, c, w_ih, w_hh, b_ih, b_hh):
        g = x_t @ w_ih.T + b_ih + h @ w_hh.T + b_hh
        i = jax.nn.sigmoid(g[:, 0 * H:1 * H])
        f = jax.nn.sigmoid(g[:, 1 * H:2 * H])
        gg = jnp.tanh(g[:, 2 * H:3 * H])
        o = jax.nn.sigmoid(g[:, 3 * H:4 * H])
        c = f * c + i * gg
        return o * jnp.tanh(c), c

    h1 = c1 = h2 = c2 = jnp.zeros((B, H), jnp.float32)
    for t in range(tokens.shape[1]):
        h1, c1 = cell(emb[:, t, :], h1, c1, params["w_ih1"], params["w_hh1"],
                      params["b_ih1"], params["b_hh1"])
        h2, c2 = cell(h1, h2, c2, params["w_ih2"], params["w_hh2"],
                      params["b_ih2"], params["b_hh2"])
    return jax.nn.sigmoid(h2 @ params["w_lin"].T + params["b_lin"])


if __name__ == "__main__":
    # Small shapes consistent with the module's forward.
    batch, seq = 2, 8
    embedding_dim, hidden_dim = 16, 32
    mak_tokens, target_size = 100, 1

    key = jax.random.PRNGKey(0)
    k_params, k_tok = jax.random.split(key)
    params = make_params(k_params, mak_tokens, embedding_dim, hidden_dim,
                         target_size)
    tokens = jax.random.randint(k_tok, (batch, seq), 0, mak_tokens, jnp.int32)

    probs = spam_forward(tokens, params, target_size)
    probs = jax.block_until_ready(probs)

    ref = spam_reference(tokens, params, target_size)
    assert probs.shape == (batch, target_size)
    assert jnp.allclose(probs, ref, atol=1e-4), (probs, ref)

    print("KERNEL_OK")
</pallas_src>

<mosaic_0001>
module attributes {stable_mosaic.version = 11 : i64} {
  func.func @spam_kernel(%arg0: memref<64x16xf32, #tpu.memory_space<vmem>>, %arg1: memref<16x128xf32, #tpu.memory_space<vmem>>, %arg2: memref<32x128xf32, #tpu.memory_space<vmem>>, %arg3: memref<1x128xf32, #tpu.memory_space<vmem>>, %arg4: memref<64x128xf32, #tpu.memory_space<vmem>>, %arg5: memref<1x128xf32, #tpu.memory_space<vmem>>, %arg6: memref<32x1xf32, #tpu.memory_space<vmem>>, %arg7: memref<1x1xf32, #tpu.memory_space<vmem>>, %arg8: memref<8x1xf32, #tpu.memory_space<vmem>>) attributes {dimension_semantics = [], scalar_prefetch = 0 : i64, scratch_operands = 0 : i64, tpu.core_type = #tpu.core_type<tc>} {
    %c0 = arith.constant 0 : index
    %c0_0 = arith.constant 0 : index
    %0 = vector.load %arg2[%c0, %c0_0] : memref<32x128xf32, #tpu.memory_space<vmem>>, vector<32x128xf32>
    %c0_1 = arith.constant 0 : index
    %c0_2 = arith.constant 0 : index
    %1 = vector.load %arg4[%c0_1, %c0_2] : memref<64x128xf32, #tpu.memory_space<vmem>>, vector<64x128xf32>
    %c0_3 = arith.constant 0 : index
    %c0_4 = arith.constant 0 : index
    %2 = vector.load %arg0[%c0_3, %c0_4] : memref<64x16xf32, #tpu.memory_space<vmem>>, vector<64x16xf32>
    %c0_5 = arith.constant 0 : index
    %c0_6 = arith.constant 0 : index
    %3 = vector.load %arg1[%c0_5, %c0_6] : memref<16x128xf32, #tpu.memory_space<vmem>>, vector<16x128xf32>
    %cst = arith.constant dense<0.000000e+00> : vector<64x128xf32>
    %4 = tpu.matmul %2, %3, %cst {dimension_numbers = #tpu.dot_dimension_numbers<[1], [0], [0], [1], [0, 0, 1, 1], [], []>} : vector<64x16xf32>, vector<16x128xf32>, vector<64x128xf32> -> vector<64x128xf32>
    %c0_7 = arith.constant 0 : index
    %c0_8 = arith.constant 0 : index
    %5 = vector.load %arg3[%c0_7, %c0_8] : memref<1x128xf32, #tpu.memory_space<vmem>>, vector<1x128xf32>
    %6 = vector.broadcast %5 : vector<1x128xf32> to vector<64x128xf32>
    %7 = arith.addf %4, %6 : vector<64x128xf32>
    %c0_9 = arith.constant 0 : index
    %c0_10 = arith.constant 0 : index
    %8 = vector.load %arg5[%c0_9, %c0_10] : memref<1x128xf32, #tpu.memory_space<vmem>>, vector<1x128xf32>
    %9 = vector.shape_cast %8 : vector<1x128xf32> to vector<1x128xf32>
    %10 = vector.broadcast %9 : vector<1x128xf32> to vector<8x128xf32>
    %cst_11 = arith.constant 0.000000e+00 : f32
    %11 = vector.broadcast %cst_11 : f32 to vector<8x32xf32>
    %12 = vector.extract_strided_slice %7 {offsets = [0, 0], sizes = [8, 128], strides = [1, 1]} : vector<64x128xf32> to vector<8x128xf32>
    %cst_12 = arith.constant dense<0.000000e+00> : vector<8x128xf32>
    %13 = tpu.matmul %11, %0, %cst_12 {dimension_numbers = #tpu.dot_dimension_numbers<[1], [0], [0], [1], [0, 0, 1, 1], [], []>} : vector<8x32xf32>, vector<32x128xf32>, vector<8x128xf32> -> vector<8x128xf32>
    %14 = arith.addf %12, %13 : vector<8x128xf32>
    %15 = arith.negf %14 : vector<8x128xf32>
    %16 = math.exp %15 : vector<8x128xf32>
    %cst_13 = arith.constant 1.000000e+00 : f32
    %17 = vector.broadcast %cst_13 : f32 to vector<8x128xf32>
    %18 = arith.addf %17, %16 : vector<8x128xf32>
    %19 = arith.divf %17, %18 : vector<8x128xf32>
    %20 = math.tanh %14 : vector<8x128xf32>
    %21 = vector.extract_strided_slice %19 {offsets = [0, 0], sizes = [8, 32], strides = [1, 1]} : vector<8x128xf32> to vector<8x32xf32>
    %22 = vector.extract_strided_slice %19 {offsets = [0, 32], sizes = [8, 32], strides = [1, 1]} : vector<8x128xf32> to vector<8x32xf32>
    %23 = vector.extract_strided_slice %20 {offsets = [0, 64], sizes = [8, 32], strides = [1, 1]} : vector<8x128xf32> to vector<8x32xf32>
    %24 = vector.extract_strided_slice %19 {offsets = [0, 96], sizes = [8, 32], strides = [1, 1]} : vector<8x128xf32> to vector<8x32xf32>
    %25 = arith.mulf %22, %11 : vector<8x32xf32>
    %26 = arith.mulf %21, %23 : vector<8x32xf32>
    %27 = arith.addf %25, %26 : vector<8x32xf32>
    %28 = math.tanh %27 : vector<8x32xf32>
    %29 = arith.mulf %24, %28 : vector<8x32xf32>
    %30 = tpu.concatenate %29, %11 in 1 : vector<8x32xf32>, vector<8x32xf32> -> vector<8x64xf32>
    %cst_14 = arith.constant dense<0.000000e+00> : vector<8x128xf32>
    %31 = tpu.matmul %30, %1, %cst_14 {dimension_numbers = #tpu.dot_dimension_numbers<[1], [0], [0], [1], [0, 0, 1, 1], [], []>} : vector<8x64xf32>, vector<64x128xf32>, vector<8x128xf32> -> vector<8x128xf32>
    %32 = arith.addf %31, %10 : vector<8x128xf32>
    %33 = arith.negf %32 : vector<8x128xf32>
    %34 = math.exp %33 : vector<8x128xf32>
    %cst_15 = arith.constant 1.000000e+00 : f32
    %35 = vector.broadcast %cst_15 : f32 to vector<8x128xf32>
    %36 = arith.addf %35, %34 : vector<8x128xf32>
    %37 = arith.divf %35, %36 : vector<8x128xf32>
    %38 = math.tanh %32 : vector<8x128xf32>
    %39 = vector.extract_strided_slice %37 {offsets = [0, 0], sizes = [8, 32], strides = [1, 1]} : vector<8x128xf32> to vector<8x32xf32>
    %40 = vector.extract_strided_slice %37 {offsets = [0, 32], sizes = [8, 32], strides = [1, 1]} : vector<8x128xf32> to vector<8x32xf32>
    %41 = vector.extract_strided_slice %38 {offsets = [0, 64], sizes = [8, 32], strides = [1, 1]} : vector<8x128xf32> to vector<8x32xf32>
    %42 = vector.extract_strided_slice %37 {offsets = [0, 96], sizes = [8, 32], strides = [1, 1]} : vector<8x128xf32> to vector<8x32xf32>
    %43 = arith.mulf %40, %11 : vector<8x32xf32>
    %44 = arith.mulf %39, %41 : vector<8x32xf32>
    %45 = arith.addf %43, %44 : vector<8x32xf32>
    %46 = math.tanh %45 : vector<8x32xf32>
    %47 = arith.mulf %42, %46 : vector<8x32xf32>
    %48 = vector.extract_strided_slice %7 {offsets = [8, 0], sizes = [8, 128], strides = [1, 1]} : vector<64x128xf32> to vector<8x128xf32>
    %cst_16 = arith.constant dense<0.000000e+00> : vector<8x128xf32>
    %49 = tpu.matmul %29, %0, %cst_16 {dimension_numbers = #tpu.dot_dimension_numbers<[1], [0], [0], [1], [0, 0, 1, 1], [], []>} : vector<8x32xf32>, vector<32x128xf32>, vector<8x128xf32> -> vector<8x128xf32>
    %50 = arith.addf %48, %49 : vector<8x128xf32>
    %51 = arith.negf %50 : vector<8x128xf32>
    %52 = math.exp %51 : vector<8x128xf32>
    %cst_17 = arith.constant 1.000000e+00 : f32
    %53 = vector.broadcast %cst_17 : f32 to vector<8x128xf32>
    %54 = arith.addf %53, %52 : vector<8x128xf32>
    %55 = arith.divf %53, %54 : vector<8x128xf32>
    %56 = math.tanh %50 : vector<8x128xf32>
    %57 = vector.extract_strided_slice %55 {offsets = [0, 0], sizes = [8, 32], strides = [1, 1]} : vector<8x128xf32> to vector<8x32xf32>
    %58 = vector.extract_strided_slice %55 {offsets = [0, 32], sizes = [8, 32], strides = [1, 1]} : vector<8x128xf32> to vector<8x32xf32>
    %59 = vector.extract_strided_slice %56 {offsets = [0, 64], sizes = [8, 32], strides = [1, 1]} : vector<8x128xf32> to vector<8x32xf32>
    %60 = vector.extract_strided_slice %55 {offsets = [0, 96], sizes = [8, 32], strides = [1, 1]} : vector<8x128xf32> to vector<8x32xf32>
    %61 = arith.mulf %58, %27 : vector<8x32xf32>
    %62 = arith.mulf %57, %59 : vector<8x32xf32>
    %63 = arith.addf %61, %62 : vector<8x32xf32>
    %64 = math.tanh %63 : vector<8x32xf32>
    %65 = arith.mulf %60, %64 : vector<8x32xf32>
    %66 = tpu.concatenate %65, %47 in 1 : vector<8x32xf32>, vector<8x32xf32> -> vector<8x64xf32>
    %cst_18 = arith.constant dense<0.000000e+00> : vector<8x128xf32>
    %67 = tpu.matmul %66, %1, %cst_18 {dimension_numbers = #tpu.dot_dimension_numbers<[1], [0], [0], [1], [0, 0, 1, 1], [], []>} : vector<8x64xf32>, vector<64x128xf32>, vector<8x128xf32> -> vector<8x128xf32>
    %68 = arith.addf %67, %10 : vector<8x128xf32>
    %69 = arith.negf %68 : vector<8x128xf32>
    %70 = math.exp %69 : vector<8x128xf32>
    %cst_19 = arith.constant 1.000000e+00 : f32
    %71 = vector.broadcast %cst_19 : f32 to vector<8x128xf32>
    %72 = arith.addf %71, %70 : vector<8x128xf32>
    %73 = arith.divf %71, %72 : vector<8x128xf32>
    %74 = math.tanh %68 : vector<8x128xf32>
    %75 = vector.extract_strided_slice %73 {offsets = [0, 0], sizes = [8, 32], strides = [1, 1]} : vector<8x128xf32> to vector<8x32xf32>
    %76 = vector.extract_strided_slice %73 {offsets = [0, 32], sizes = [8, 32], strides = [1, 1]} : vector<8x128xf32> to vector<8x32xf32>
    %77 = vector.extract_strided_slice %74 {offsets = [0, 64], sizes = [8, 32], strides = [1, 1]} : vector<8x128xf32> to vector<8x32xf32>
    %78 = vector.extract_strided_slice %73 {offsets = [0, 96], sizes = [8, 32], strides = [1, 1]} : vector<8x128xf32> to vector<8x32xf32>
    %79 = arith.mulf %76, %45 : vector<8x32xf32>
    %80 = arith.mulf %75, %77 : vector<8x32xf32>
    %81 = arith.addf %79, %80 : vector<8x32xf32>
    %82 = math.tanh %81 : vector<8x32xf32>
    %83 = arith.mulf %78, %82 : vector<8x32xf32>
    %84 = vector.extract_strided_slice %7 {offsets = [16, 0], sizes = [8, 128], strides = [1, 1]} : vector<64x128xf32> to vector<8x128xf32>
    %cst_20 = arith.constant dense<0.000000e+00> : vector<8x128xf32>
    %85 = tpu.matmul %65, %0, %cst_20 {dimension_numbers = #tpu.dot_dimension_numbers<[1], [0], [0], [1], [0, 0, 1, 1], [], []>} : vector<8x32xf32>, vector<32x128xf32>, vector<8x128xf32> -> vector<8x128xf32>
    %86 = arith.addf %84, %85 : vector<8x128xf32>
    %87 = arith.negf %86 : vector<8x128xf32>
    %88 = math.exp %87 : vector<8x128xf32>
    %cst_21 = arith.constant 1.000000e+00 : f32
    %89 = vector.broadcast %cst_21 : f32 to vector<8x128xf32>
    %90 = arith.addf %89, %88 : vector<8x128xf32>
    %91 = arith.divf %89, %90 : vector<8x128xf32>
    %92 = math.tanh %86 : vector<8x128xf32>
    %93 = vector.extract_strided_slice %91 {offsets = [0, 0], sizes = [8, 32], strides = [1, 1]} : vector<8x128xf32> to vector<8x32xf32>
    %94 = vector.extract_strided_slice %91 {offsets = [0, 32], sizes = [8, 32], strides = [1, 1]} : vector<8x128xf32> to vector<8x32xf32>
    %95 = vector.extract_strided_slice %92 {offsets = [0, 64], sizes = [8, 32], strides = [1, 1]} : vector<8x128xf32> to vector<8x32xf32>
    %96 = vector.extract_strided_slice %91 {offsets = [0, 96], sizes = [8, 32], strides = [1, 1]} : vector<8x128xf32> to vector<8x32xf32>
    %97 = arith.mulf %94, %63 : vector<8x32xf32>
    %98 = arith.mulf %93, %95 : vector<8x32xf32>
    %99 = arith.addf %97, %98 : vector<8x32xf32>
    %100 = math.tanh %99 : vector<8x32xf32>
    %101 = arith.mulf %96, %100 : vector<8x32xf32>
    %102 = tpu.concatenate %101, %83 in 1 : vector<8x32xf32>, vector<8x32xf32> -> vector<8x64xf32>
    %cst_22 = arith.constant dense<0.000000e+00> : vector<8x128xf32>
    %103 = tpu.matmul %102, %1, %cst_22 {dimension_numbers = #tpu.dot_dimension_numbers<[1], [0], [0], [1], [0, 0, 1, 1], [], []>} : vector<8x64xf32>, vector<64x128xf32>, vector<8x128xf32> -> vector<8x128xf32>
    %104 = arith.addf %103, %10 : vector<8x128xf32>
    %105 = arith.negf %104 : vector<8x128xf32>
    %106 = math.exp %105 : vector<8x128xf32>
    %cst_23 = arith.constant 1.000000e+00 : f32
    %107 = vector.broadcast %cst_23 : f32 to vector<8x128xf32>
    %108 = arith.addf %107, %106 : vector<8x128xf32>
    %109 = arith.divf %107, %108 : vector<8x128xf32>
    %110 = math.tanh %104 : vector<8x128xf32>
    %111 = vector.extract_strided_slice %109 {offsets = [0, 0], sizes = [8, 32], strides = [1, 1]} : vector<8x128xf32> to vector<8x32xf32>
    %112 = vector.extract_strided_slice %109 {offsets = [0, 32], sizes = [8, 32], strides = [1, 1]} : vector<8x128xf32> to vector<8x32xf32>
    %113 = vector.extract_strided_slice %110 {offsets = [0, 64], sizes = [8, 32], strides = [1, 1]} : vector<8x128xf32> to vector<8x32xf32>
    %114 = vector.extract_strided_slice %109 {offsets = [0, 96], sizes = [8, 32], strides = [1, 1]} : vector<8x128xf32> to vector<8x32xf32>
    %115 = arith.mulf %112, %81 : vector<8x32xf32>
    %116 = arith.mulf %111, %113 : vector<8x32xf32>
    %117 = arith.addf %115, %116 : vector<8x32xf32>
    %118 = math.tanh %117 : vector<8x32xf32>
    %119 = arith.mulf %114, %118 : vector<8x32xf32>
    %120 = vector.extract_strided_slice %7 {offsets = [24, 0], sizes = [8, 128], strides = [1, 1]} : vector<64x128xf32> to vector<8x128xf32>
    %cst_24 = arith.constant dense<0.000000e+00> : vector<8x128xf32>
    %121 = tpu.matmul %101, %0, %cst_24 {dimension_numbers = #tpu.dot_dimension_numbers<[1], [0], [0], [1], [0, 0, 1, 1], [], []>} : vector<8x32xf32>, vector<32x128xf32>, vector<8x128xf32> -> vector<8x128xf32>
    %122 = arith.addf %120, %121 : vector<8x128xf32>
    %123 = arith.negf %122 : vector<8x128xf32>
    %124 = math.exp %123 : vector<8x128xf32>
    %cst_25 = arith.constant 1.000000e+00 : f32
    %125 = vector.broadcast %cst_25 : f32 to vector<8x128xf32>
    %126 = arith.addf %125, %124 : vector<8x128xf32>
    %127 = arith.divf %125, %126 : vector<8x128xf32>
    %128 = math.tanh %122 : vector<8x128xf32>
    %129 = vector.extract_strided_slice %127 {offsets = [0, 0], sizes = [8, 32], strides = [1, 1]} : vector<8x128xf32> to vector<8x32xf32>
    %130 = vector.extract_strided_slice %127 {offsets = [0, 32], sizes = [8, 32], strides = [1, 1]} : vector<8x128xf32> to vector<8x32xf32>
    %131 = vector.extract_strided_slice %128 {offsets = [0, 64], sizes = [8, 32], strides = [1, 1]} : vector<8x128xf32> to vector<8x32xf32>
    %132 = vector.extract_strided_slice %127 {offsets = [0, 96], sizes = [8, 32], strides = [1, 1]} : vector<8x128xf32> to vector<8x32xf32>
    %133 = arith.mulf %130, %99 : vector<8x32xf32>
    %134 = arith.mulf %129, %131 : vector<8x32xf32>
    %135 = arith.addf %133, %134 : vector<8x32xf32>
    %136 = math.tanh %135 : vector<8x32xf32>
    %137 = arith.mulf %132, %136 : vector<8x32xf32>
    %138 = tpu.concatenate %137, %119 in 1 : vector<8x32xf32>, vector<8x32xf32> -> vector<8x64xf32>
    %cst_26 = arith.constant dense<0.000000e+00> : vector<8x128xf32>
    %139 = tpu.matmul %138, %1, %cst_26 {dimension_numbers = #tpu.dot_dimension_numbers<[1], [0], [0], [1], [0, 0, 1, 1], [], []>} : vector<8x64xf32>, vector<64x128xf32>, vector<8x128xf32> -> vector<8x128xf32>
    %140 = arith.addf %139, %10 : vector<8x128xf32>
    %141 = arith.negf %140 : vector<8x128xf32>
    %142 = math.exp %141 : vector<8x128xf32>
    %cst_27 = arith.constant 1.000000e+00 : f32
    %143 = vector.broadcast %cst_27 : f32 to vector<8x128xf32>
    %144 = arith.addf %143, %142 : vector<8x128xf32>
    %145 = arith.divf %143, %144 : vector<8x128xf32>
    %146 = math.tanh %140 : vector<8x128xf32>
    %147 = vector.extract_strided_slice %145 {offsets = [0, 0], sizes = [8, 32], strides = [1, 1]} : vector<8x128xf32> to vector<8x32xf32>
    %148 = vector.extract_strided_slice %145 {offsets = [0, 32], sizes = [8, 32], strides = [1, 1]} : vector<8x128xf32> to vector<8x32xf32>
    %149 = vector.extract_strided_slice %146 {offsets = [0, 64], sizes = [8, 32], strides = [1, 1]} : vector<8x128xf32> to vector<8x32xf32>
    %150 = vector.extract_strided_slice %145 {offsets = [0, 96], sizes = [8, 32], strides = [1, 1]} : vector<8x128xf32> to vector<8x32xf32>
    %151 = arith.mulf %148, %117 : vector<8x32xf32>
    %152 = arith.mulf %147, %149 : vector<8x32xf32>
    %153 = arith.addf %151, %152 : vector<8x32xf32>
    %154 = math.tanh %153 : vector<8x32xf32>
    %155 = arith.mulf %150, %154 : vector<8x32xf32>
    %156 = vector.extract_strided_slice %7 {offsets = [32, 0], sizes = [8, 128], strides = [1, 1]} : vector<64x128xf32> to vector<8x128xf32>
    %cst_28 = arith.constant dense<0.000000e+00> : vector<8x128xf32>
    %157 = tpu.matmul %137, %0, %cst_28 {dimension_numbers = #tpu.dot_dimension_numbers<[1], [0], [0], [1], [0, 0, 1, 1], [], []>} : vector<8x32xf32>, vector<32x128xf32>, vector<8x128xf32> -> vector<8x128xf32>
    %158 = arith.addf %156, %157 : vector<8x128xf32>
    %159 = arith.negf %158 : vector<8x128xf32>
    %160 = math.exp %159 : vector<8x128xf32>
    %cst_29 = arith.constant 1.000000e+00 : f32
    %161 = vector.broadcast %cst_29 : f32 to vector<8x128xf32>
    %162 = arith.addf %161, %160 : vector<8x128xf32>
    %163 = arith.divf %161, %162 : vector<8x128xf32>
    %164 = math.tanh %158 : vector<8x128xf32>
    %165 = vector.extract_strided_slice %163 {offsets = [0, 0], sizes = [8, 32], strides = [1, 1]} : vector<8x128xf32> to vector<8x32xf32>
    %166 = vector.extract_strided_slice %163 {offsets = [0, 32], sizes = [8, 32], strides = [1, 1]} : vector<8x128xf32> to vector<8x32xf32>
    %167 = vector.extract_strided_slice %164 {offsets = [0, 64], sizes = [8, 32], strides = [1, 1]} : vector<8x128xf32> to vector<8x32xf32>
    %168 = vector.extract_strided_slice %163 {offsets = [0, 96], sizes = [8, 32], strides = [1, 1]} : vector<8x128xf32> to vector<8x32xf32>
    %169 = arith.mulf %166, %135 : vector<8x32xf32>
    %170 = arith.mulf %165, %167 : vector<8x32xf32>
    %171 = arith.addf %169, %170 : vector<8x32xf32>
    %172 = math.tanh %171 : vector<8x32xf32>
    %173 = arith.mulf %168, %172 : vector<8x32xf32>
    %174 = tpu.concatenate %173, %155 in 1 : vector<8x32xf32>, vector<8x32xf32> -> vector<8x64xf32>
    %cst_30 = arith.constant dense<0.000000e+00> : vector<8x128xf32>
    %175 = tpu.matmul %174, %1, %cst_30 {dimension_numbers = #tpu.dot_dimension_numbers<[1], [0], [0], [1], [0, 0, 1, 1], [], []>} : vector<8x64xf32>, vector<64x128xf32>, vector<8x128xf32> -> vector<8x128xf32>
    %176 = arith.addf %175, %10 : vector<8x128xf32>
    %177 = arith.negf %176 : vector<8x128xf32>
    %178 = math.exp %177 : vector<8x128xf32>
    %cst_31 = arith.constant 1.000000e+00 : f32
    %179 = vector.broadcast %cst_31 : f32 to vector<8x128xf32>
    %180 = arith.addf %179, %178 : vector<8x128xf32>
    %181 = arith.divf %179, %180 : vector<8x128xf32>
    %182 = math.tanh %176 : vector<8x128xf32>
    %183 = vector.extract_strided_slice %181 {offsets = [0, 0], sizes = [8, 32], strides = [1, 1]} : vector<8x128xf32> to vector<8x32xf32>
    %184 = vector.extract_strided_slice %181 {offsets = [0, 32], sizes = [8, 32], strides = [1, 1]} : vector<8x128xf32> to vector<8x32xf32>
    %185 = vector.extract_strided_slice %182 {offsets = [0, 64], sizes = [8, 32], strides = [1, 1]} : vector<8x128xf32> to vector<8x32xf32>
    %186 = vector.extract_strided_slice %181 {offsets = [0, 96], sizes = [8, 32], strides = [1, 1]} : vector<8x128xf32> to vector<8x32xf32>
    %187 = arith.mulf %184, %153 : vector<8x32xf32>
    %188 = arith.mulf %183, %185 : vector<8x32xf32>
    %189 = arith.addf %187, %188 : vector<8x32xf32>
    %190 = math.tanh %189 : vector<8x32xf32>
    %191 = arith.mulf %186, %190 : vector<8x32xf32>
    %192 = vector.extract_strided_slice %7 {offsets = [40, 0], sizes = [8, 128], strides = [1, 1]} : vector<64x128xf32> to vector<8x128xf32>
    %cst_32 = arith.constant dense<0.000000e+00> : vector<8x128xf32>
    %193 = tpu.matmul %173, %0, %cst_32 {dimension_numbers = #tpu.dot_dimension_numbers<[1], [0], [0], [1], [0, 0, 1, 1], [], []>} : vector<8x32xf32>, vector<32x128xf32>, vector<8x128xf32> -> vector<8x128xf32>
    %194 = arith.addf %192, %193 : vector<8x128xf32>
    %195 = arith.negf %194 : vector<8x128xf32>
    %196 = math.exp %195 : vector<8x128xf32>
    %cst_33 = arith.constant 1.000000e+00 : f32
    %197 = vector.broadcast %cst_33 : f32 to vector<8x128xf32>
    %198 = arith.addf %197, %196 : vector<8x128xf32>
    %199 = arith.divf %197, %198 : vector<8x128xf32>
    %200 = math.tanh %194 : vector<8x128xf32>
    %201 = vector.extract_strided_slice %199 {offsets = [0, 0], sizes = [8, 32], strides = [1, 1]} : vector<8x128xf32> to vector<8x32xf32>
    %202 = vector.extract_strided_slice %199 {offsets = [0, 32], sizes = [8, 32], strides = [1, 1]} : vector<8x128xf32> to vector<8x32xf32>
    %203 = vector.extract_strided_slice %200 {offsets = [0, 64], sizes = [8, 32], strides = [1, 1]} : vector<8x128xf32> to vector<8x32xf32>
    %204 = vector.extract_strided_slice %199 {offsets = [0, 96], sizes = [8, 32], strides = [1, 1]} : vector<8x128xf32> to vector<8x32xf32>
    %205 = arith.mulf %202, %171 : vector<8x32xf32>
    %206 = arith.mulf %201, %203 : vector<8x32xf32>
    %207 = arith.addf %205, %206 : vector<8x32xf32>
    %208 = math.tanh %207 : vector<8x32xf32>
    %209 = arith.mulf %204, %208 : vector<8x32xf32>
    %210 = tpu.concatenate %209, %191 in 1 : vector<8x32xf32>, vector<8x32xf32> -> vector<8x64xf32>
    %cst_34 = arith.constant dense<0.000000e+00> : vector<8x128xf32>
    %211 = tpu.matmul %210, %1, %cst_34 {dimension_numbers = #tpu.dot_dimension_numbers<[1], [0], [0], [1], [0, 0, 1, 1], [], []>} : vector<8x64xf32>, vector<64x128xf32>, vector<8x128xf32> -> vector<8x128xf32>
    %212 = arith.addf %211, %10 : vector<8x128xf32>
    %213 = arith.negf %212 : vector<8x128xf32>
    %214 = math.exp %213 : vector<8x128xf32>
    %cst_35 = arith.constant 1.000000e+00 : f32
    %215 = vector.broadcast %cst_35 : f32 to vector<8x128xf32>
    %216 = arith.addf %215, %214 : vector<8x128xf32>
    %217 = arith.divf %215, %216 : vector<8x128xf32>
    %218 = math.tanh %212 : vector<8x128xf32>
    %219 = vector.extract_strided_slice %217 {offsets = [0, 0], sizes = [8, 32], strides = [1, 1]} : vector<8x128xf32> to vector<8x32xf32>
    %220 = vector.extract_strided_slice %217 {offsets = [0, 32], sizes = [8, 32], strides = [1, 1]} : vector<8x128xf32> to vector<8x32xf32>
    %221 = vector.extract_strided_slice %218 {offsets = [0, 64], sizes = [8, 32], strides = [1, 1]} : vector<8x128xf32> to vector<8x32xf32>
    %222 = vector.extract_strided_slice %217 {offsets = [0, 96], sizes = [8, 32], strides = [1, 1]} : vector<8x128xf32> to vector<8x32xf32>
    %223 = arith.mulf %220, %189 : vector<8x32xf32>
    %224 = arith.mulf %219, %221 : vector<8x32xf32>
    %225 = arith.addf %223, %224 : vector<8x32xf32>
    %226 = math.tanh %225 : vector<8x32xf32>
    %227 = arith.mulf %222, %226 : vector<8x32xf32>
    %228 = vector.extract_strided_slice %7 {offsets = [48, 0], sizes = [8, 128], strides = [1, 1]} : vector<64x128xf32> to vector<8x128xf32>
    %cst_36 = arith.constant dense<0.000000e+00> : vector<8x128xf32>
    %229 = tpu.matmul %209, %0, %cst_36 {dimension_numbers = #tpu.dot_dimension_numbers<[1], [0], [0], [1], [0, 0, 1, 1], [], []>} : vector<8x32xf32>, vector<32x128xf32>, vector<8x128xf32> -> vector<8x128xf32>
    %230 = arith.addf %228, %229 : vector<8x128xf32>
    %231 = arith.negf %230 : vector<8x128xf32>
    %232 = math.exp %231 : vector<8x128xf32>
    %cst_37 = arith.constant 1.000000e+00 : f32
    %233 = vector.broadcast %cst_37 : f32 to vector<8x128xf32>
    %234 = arith.addf %233, %232 : vector<8x128xf32>
    %235 = arith.divf %233, %234 : vector<8x128xf32>
    %236 = math.tanh %230 : vector<8x128xf32>
    %237 = vector.extract_strided_slice %235 {offsets = [0, 0], sizes = [8, 32], strides = [1, 1]} : vector<8x128xf32> to vector<8x32xf32>
    %238 = vector.extract_strided_slice %235 {offsets = [0, 32], sizes = [8, 32], strides = [1, 1]} : vector<8x128xf32> to vector<8x32xf32>
    %239 = vector.extract_strided_slice %236 {offsets = [0, 64], sizes = [8, 32], strides = [1, 1]} : vector<8x128xf32> to vector<8x32xf32>
    %240 = vector.extract_strided_slice %235 {offsets = [0, 96], sizes = [8, 32], strides = [1, 1]} : vector<8x128xf32> to vector<8x32xf32>
    %241 = arith.mulf %238, %207 : vector<8x32xf32>
    %242 = arith.mulf %237, %239 : vector<8x32xf32>
    %243 = arith.addf %241, %242 : vector<8x32xf32>
    %244 = math.tanh %243 : vector<8x32xf32>
    %245 = arith.mulf %240, %244 : vector<8x32xf32>
    %246 = tpu.concatenate %245, %227 in 1 : vector<8x32xf32>, vector<8x32xf32> -> vector<8x64xf32>
    %cst_38 = arith.constant dense<0.000000e+00> : vector<8x128xf32>
    %247 = tpu.matmul %246, %1, %cst_38 {dimension_numbers = #tpu.dot_dimension_numbers<[1], [0], [0], [1], [0, 0, 1, 1], [], []>} : vector<8x64xf32>, vector<64x128xf32>, vector<8x128xf32> -> vector<8x128xf32>
    %248 = arith.addf %247, %10 : vector<8x128xf32>
    %249 = arith.negf %248 : vector<8x128xf32>
    %250 = math.exp %249 : vector<8x128xf32>
    %cst_39 = arith.constant 1.000000e+00 : f32
    %251 = vector.broadcast %cst_39 : f32 to vector<8x128xf32>
    %252 = arith.addf %251, %250 : vector<8x128xf32>
    %253 = arith.divf %251, %252 : vector<8x128xf32>
    %254 = math.tanh %248 : vector<8x128xf32>
    %255 = vector.extract_strided_slice %253 {offsets = [0, 0], sizes = [8, 32], strides = [1, 1]} : vector<8x128xf32> to vector<8x32xf32>
    %256 = vector.extract_strided_slice %253 {offsets = [0, 32], sizes = [8, 32], strides = [1, 1]} : vector<8x128xf32> to vector<8x32xf32>
    %257 = vector.extract_strided_slice %254 {offsets = [0, 64], sizes = [8, 32], strides = [1, 1]} : vector<8x128xf32> to vector<8x32xf32>
    %258 = vector.extract_strided_slice %253 {offsets = [0, 96], sizes = [8, 32], strides = [1, 1]} : vector<8x128xf32> to vector<8x32xf32>
    %259 = arith.mulf %256, %225 : vector<8x32xf32>
    %260 = arith.mulf %255, %257 : vector<8x32xf32>
    %261 = arith.addf %259, %260 : vector<8x32xf32>
    %262 = math.tanh %261 : vector<8x32xf32>
    %263 = arith.mulf %258, %262 : vector<8x32xf32>
    %264 = vector.extract_strided_slice %7 {offsets = [56, 0], sizes = [8, 128], strides = [1, 1]} : vector<64x128xf32> to vector<8x128xf32>
    %cst_40 = arith.constant dense<0.000000e+00> : vector<8x128xf32>
    %265 = tpu.matmul %245, %0, %cst_40 {dimension_numbers = #tpu.dot_dimension_numbers<[1], [0], [0], [1], [0, 0, 1, 1], [], []>} : vector<8x32xf32>, vector<32x128xf32>, vector<8x128xf32> -> vector<8x128xf32>
    %266 = arith.addf %264, %265 : vector<8x128xf32>
    %267 = arith.negf %266 : vector<8x128xf32>
    %268 = math.exp %267 : vector<8x128xf32>
    %cst_41 = arith.constant 1.000000e+00 : f32
    %269 = vector.broadcast %cst_41 : f32 to vector<8x128xf32>
    %270 = arith.addf %269, %268 : vector<8x128xf32>
    %271 = arith.divf %269, %270 : vector<8x128xf32>
    %272 = math.tanh %266 : vector<8x128xf32>
    %273 = vector.extract_strided_slice %271 {offsets = [0, 0], sizes = [8, 32], strides = [1, 1]} : vector<8x128xf32> to vector<8x32xf32>
    %274 = vector.extract_strided_slice %271 {offsets = [0, 32], sizes = [8, 32], strides = [1, 1]} : vector<8x128xf32> to vector<8x32xf32>
    %275 = vector.extract_strided_slice %272 {offsets = [0, 64], sizes = [8, 32], strides = [1, 1]} : vector<8x128xf32> to vector<8x32xf32>
    %276 = vector.extract_strided_slice %271 {offsets = [0, 96], sizes = [8, 32], strides = [1, 1]} : vector<8x128xf32> to vector<8x32xf32>
    %277 = arith.mulf %274, %243 : vector<8x32xf32>
    %278 = arith.mulf %273, %275 : vector<8x32xf32>
    %279 = arith.addf %277, %278 : vector<8x32xf32>
    %280 = math.tanh %279 : vector<8x32xf32>
    %281 = arith.mulf %276, %280 : vector<8x32xf32>
    %282 = tpu.concatenate %281, %263 in 1 : vector<8x32xf32>, vector<8x32xf32> -> vector<8x64xf32>
    %cst_42 = arith.constant dense<0.000000e+00> : vector<8x128xf32>
    %283 = tpu.matmul %282, %1, %cst_42 {dimension_numbers = #tpu.dot_dimension_numbers<[1], [0], [0], [1], [0, 0, 1, 1], [], []>} : vector<8x64xf32>, vector<64x128xf32>, vector<8x128xf32> -> vector<8x128xf32>
    %284 = arith.addf %283, %10 : vector<8x128xf32>
    %285 = arith.negf %284 : vector<8x128xf32>
    %286 = math.exp %285 : vector<8x128xf32>
    %cst_43 = arith.constant 1.000000e+00 : f32
    %287 = vector.broadcast %cst_43 : f32 to vector<8x128xf32>
    %288 = arith.addf %287, %286 : vector<8x128xf32>
    %289 = arith.divf %287, %288 : vector<8x128xf32>
    %290 = math.tanh %284 : vector<8x128xf32>
    %291 = vector.extract_strided_slice %289 {offsets = [0, 0], sizes = [8, 32], strides = [1, 1]} : vector<8x128xf32> to vector<8x32xf32>
    %292 = vector.extract_strided_slice %289 {offsets = [0, 32], sizes = [8, 32], strides = [1, 1]} : vector<8x128xf32> to vector<8x32xf32>
    %293 = vector.extract_strided_slice %290 {offsets = [0, 64], sizes = [8, 32], strides = [1, 1]} : vector<8x128xf32> to vector<8x32xf32>
    %294 = vector.extract_strided_slice %289 {offsets = [0, 96], sizes = [8, 32], strides = [1, 1]} : vector<8x128xf32> to vector<8x32xf32>
    %295 = arith.mulf %292, %261 : vector<8x32xf32>
    %296 = arith.mulf %291, %293 : vector<8x32xf32>
    %297 = arith.addf %295, %296 : vector<8x32xf32>
    %298 = math.tanh %297 : vector<8x32xf32>
    %299 = arith.mulf %294, %298 : vector<8x32xf32>
    %c0_44 = arith.constant 0 : index
    %c0_45 = arith.constant 0 : index
    %300 = vector.load %arg6[%c0_44, %c0_45] : memref<32x1xf32, #tpu.memory_space<vmem>>, vector<32x1xf32>
    %cst_46 = arith.constant dense<0.000000e+00> : vector<8x1xf32>
    %301 = tpu.matmul %299, %300, %cst_46 {dimension_numbers = #tpu.dot_dimension_numbers<[1], [0], [0], [1], [0, 0, 1, 1], [], []>} : vector<8x32xf32>, vector<32x1xf32>, vector<8x1xf32> -> vector<8x1xf32>
    %c0_47 = arith.constant 0 : index
    %c0_48 = arith.constant 0 : index
    %302 = vector.load %arg7[%c0_47, %c0_48] : memref<1x1xf32, #tpu.memory_space<vmem>>, vector<1x1xf32>
    %303 = vector.broadcast %302 : vector<1x1xf32> to vector<8x1xf32>
    %304 = arith.addf %301, %303 : vector<8x1xf32>
    %305 = arith.negf %304 : vector<8x1xf32>
    %306 = math.exp %305 : vector<8x1xf32>
    %cst_49 = arith.constant 1.000000e+00 : f32
    %307 = vector.broadcast %cst_49 : f32 to vector<8x1xf32>
    %308 = arith.addf %307, %306 : vector<8x1xf32>
    %309 = arith.divf %307, %308 : vector<8x1xf32>
    %c0_50 = arith.constant 0 : index
    %c0_51 = arith.constant 0 : index
    %310 = vector.load %arg8[%c0_50, %c0_51] : memref<8x1xf32, #tpu.memory_space<vmem>>, vector<8x1xf32>
    tpu.vector_store %arg8[%c0_50, %c0_51], %309 {strides = array<i32>} : memref<8x1xf32, #tpu.memory_space<vmem>>, vector<8x1xf32>,
    return
  }
}

</mosaic_0001>

<bundles_post_ra>
// kernel: tpu_custom_call.1
= control target key start
LH: loop header
LB: loop body
LE: loop exit
PB: predicated region body
PF: predicated region fallthrough
CT: control target
= control target key end

     0   :  { %v2506_v0 = vmov 0.0   ;;  %vm2507_vm0 = vmmov 0   ;;  %vm60_vm1 = vcmask 130048   ;;  %s2508_s22 = smov 64   ;;  %s2509_s23 = smov 32   ;;  %vm197_vm2 = vcmask 261120   ;;  %s3117_s1 = inlined_call_operand.vmem [shape: f32[16,128], index: 1, kind: input, shape index: {}]   ;;  %s3118_s2 = inlined_call_operand.vmem [shape: f32[32,128], index: 2, kind: input, shape index: {}]   ;;  %s3119_s0 = inlined_call_operand.vmem [shape: f32[64,16], index: 0, kind: input, shape index: {}]   ;;  %s3120_s3 = inlined_call_operand.vmem [shape: f32[1,128], index: 3, kind: input, shape index: {}]   ;;  %s3121_s4 = inlined_call_operand.vmem [shape: f32[64,128], index: 4, kind: input, shape index: {}]   ;;  %s3122_s5 = inlined_call_operand.vmem [shape: f32[1,128], index: 5, kind: input, shape index: {}]   ;;  %s3123_s6 = inlined_call_operand.vmem [shape: f32[32,1], index: 6, kind: input, shape index: {}]   ;;  %s3124_s7 = inlined_call_operand.<no memory space> [shape: f32[1,1], index: 7, kind: input, shape index: {}]   ;;  %s3125_s8 = inlined_call_operand.vmem [shape: f32[8,1], index: 8, kind: output, shape index: {}]  }
   0x1   :  { %2105 = vmatprep.subr.mxu1 %v2506_v0  ;;  %v52_v1 = vld [vmem:[%s3117_s1 + $0x8] sm:$0xff]  ;;  %v2562_v2 = vld [vmem:[%s3118_s2 + $0x18] sm:$0xff]  ;;  %v51_v3 = vld [vmem:[%s3117_s1] sm:$0xff]  ;;  %2113 = vmatprep.mubr.msk.f32.mxu1 %vm2507_vm0, %v2506_v0  ;;  %vm301_vm3 = vcmask 523264   ;;  %vm1912_vm4 = vcmask 7168  }
   0x2   :  { %2089 = vmatprep.subr.mxu0 %v52_v1  ;;  %2106 = vmatpush3.msra.mxu1 %v2562_v2  ;;  %v2573_v4 = vld [vmem:[%s3118_s2 + $0x10] sm:$0xff]  ;;  %v43_v5 = vld [vmem:[%s3119_s0] sm:$0xff]  ;;  %v44_v6 = vld [vmem:[%s3119_s0 + $0x8] sm:$0xff] }
   0x3   :  { %2090 = vmatpush3.msra.mxu0 %v52_v1  ;;  %2107 = vmatprep.subr.mxu1 %v2506_v0  ;;  %v2586_v7 = vld [vmem:[%s3118_s2 + $0x8] sm:$0xff]  ;;  %v2594_v8 = vld [vmem:[%s3118_s2] sm:$0xff]  ;;  %v45_v26 = vld [vmem:[%s3119_s0 + $0x10] sm:$0xff] }
   0x4   :  { %2091 = vmatprep.subr.mxu0 %v51_v3  ;;  %2108 = vmatpush3.msra.mxu1 %v2573_v4  ;;  %v2617_v10 = vld [vmem:[%s3120_s3] ss:$0 sm:$0xff]  ;;  %v46_v27 = vld [vmem:[%s3119_s0 + $0x18] sm:$0xff]  ;;  %v2640_v29 = vld [vmem:[%s3121_s4 + $0x30] sm:$0xff] }
   0x5   :  { %2092 = vmatpush3.msra.mxu0 %v51_v3  ;;  %2093 = vmatprep.mubr.msk.f32.mxu0 %vm60_vm1, %v43_v5  ;;  %v2634_v28 = vld [vmem:[%s3121_s4 + $0x38] sm:$0xff]  ;;  %v47_v30 = vld [vmem:[%s3119_s0 + $0x20] sm:$0xff]  ;;  %v2651_v31 = vld [vmem:[%s3121_s4 + $0x28] sm:$0xff] }
   0x6   :  { %2109 = vmatprep.subr.mxu1 %v2506_v0  ;;  %2094 = vmatmul.mubr.msk.f32.vlgmr.msra.gmra.mxu0 %vm60_vm1, %v44_v6  ;;  %v48_v32 = vld [vmem:[%s3119_s0 + $0x28] sm:$0xff]  ;;  %v2662_v33 = vld [vmem:[%s3121_s4 + $0x20] sm:$0xff]  ;;  %v49_v34 = vld [vmem:[%s3119_s0 + $0x30] sm:$0xff] }
   0x7   :  { %2110 = vmatpush3.msra.mxu1 %v2586_v7  ;;  %2116 = vmatprep.subr.mxu0 %v2506_v0  ;;  %v2673_v35 = vld [vmem:[%s3121_s4 + $0x18] sm:$0xff]  ;;  %v2685_v38 = vld [vmem:[%s3121_s4 + $0x10] sm:$0xff]  ;;  %v2693_v39 = vld [vmem:[%s3121_s4 + $0x8] sm:$0xff] }
   0x8   :  { %2111 = vmatprep.subr.mxu1 %v2506_v0  ;;  %2096 = vmatprep.mubr.msk.f32.mxu0 %vm60_vm1, %v45_v26  ;;  %v50_v36 = vld [vmem:[%s3119_s0 + $0x38] sm:$0xff]  ;;  %v2702_v40 = vld [vmem:[%s3121_s4] sm:$0xff] }
   0x9   :  { %2112 = vmatpush3.msra.mxu1 %v2594_v8  ;;  %2117 = vmatpush3.msra.mxu0 %v2634_v28  ;;  %v2757_v52 = vld [vmem:[%s3122_s5] ss:$0 sm:$0xff] }
   0xa   :  { %2114 = vmatmul.mubr.f32.vlgmr.msra.gmra.mxu1 %v2506_v0  ;;  %2135 = vmatprep.subr.mxu1 %v2506_v0 }
   0xb   :  { %2136 = vmatpush3.msra.mxu1 %v2562_v2  ;;  %2143 = vmatprep.mubr.msk.f32.mxu1 %vm2507_vm0, %v2506_v0 }
   0xc   :  { %2137 = vmatprep.subr.mxu1 %v2506_v0  ;;  %2118 = vmatprep.subr.mxu0 %v2506_v0 }
   0xd   :  { %2138 = vmatpush3.msra.mxu1 %v2573_v4  ;;  %2097 = vmatmul.mubr.msk.f32.gmra.mxu0 %vm60_vm1, %v46_v27 }
   0xe   :  { %2139 = vmatprep.subr.mxu1 %v2506_v0  ;;  %2119 = vmatpush3.msra.mxu0 %v2640_v29 }
   0xf   :  { %2140 = vmatpush3.msra.mxu1 %v2586_v7  ;;  %2099 = vmatprep.mubr.msk.f32.mxu0 %vm60_vm1, %v47_v30 }
  0x10   :  { %2141 = vmatprep.subr.mxu1 %v2506_v0  ;;  %2120 = vmatprep.subr.mxu0 %v2506_v0 }
  0x11   :  { %2142 = vmatpush3.msra.mxu1 %v2594_v8  ;;  %2121 = vmatpush3.msra.mxu0 %v2651_v31 }
  0x12   :  { %2146 = vmatprep.subr.mxu1 %v2506_v0  ;;  %2122 = vmatprep.subr.mxu0 %v2506_v0 }
  0x13   :  { %2100 = vmatmul.mubr.msk.f32.gmra.mxu0 %vm60_vm1, %v48_v32 }
  0x14   :  { %2123 = vmatpush3.msra.mxu0 %v2662_v33  ;;  %2102 = vmatprep.mubr.msk.f32.mxu0 %vm60_vm1, %v49_v34 }
  0x15   :  { %2124 = vmatprep.subr.mxu0 %v2506_v0 }
  0x16   :  { %2125 = vmatpush3.msra.mxu0 %v2673_v35 }
  0x17   :  { %2126 = vmatprep.subr.mxu0 %v2506_v0  ;;  %2103 = vmatmul.mubr.msk.f32.gmra.mxu0 %vm60_vm1, %v50_v36 }
  0x18   :  { %2127 = vmatpush3.msra.mxu0 %v2685_v38  ;;  %2132 = vmatprep.mubr.msk.f32.mxu0 %vm2507_vm0, %v2506_v0 }
  0x19   :  { %2128 = vmatprep.subr.mxu0 %v2506_v0 }
  0x1a   :  { %2129 = vmatpush3.msra.mxu0 %v2693_v39 }
  0x1b   :  { %2130 = vmatprep.subr.mxu0 %v2506_v0 }
  0x1c   :  { %2131 = vmatpush3.msra.mxu0 %v2702_v40 }
  0x1d   :  { %2165 = vmatprep.subr.mxu0 %v2506_v0 }
  0xc6   :  { %v2612_v9 = vpop.f32.mrf.mxu0 }
  0xc7   :  { %v157_v50 = vadd.f32 %v2612_v9, %v2617_v10 }
  0xc8   :  { %v151_v11 = vpop.f32.mrf.mxu0 }
  0xc9   :  { %v152_v12 = vadd.f32 %v2617_v10, %v151_v11 }
  0xca   :  { %v267_v13 = vpop.f32.mrf.mxu1 }
  0xcb   :  { %v271_v14 = vadd.f32 %v267_v13, %v152_v12 }
  0xcc   :  { %v2115_v15 = vpop.f32.mrf.mxu1 }
  0xcd   :  { %2360 = vtanh.f32 %v271_v14  ;;  %v1928_v17 = vmul.f32 -1.442695, %v271_v14  ;;  %v2740_v45 = vpop.f32.mrf.mxu0 }
  0xcf   :  { %2362 = vpow2.f32 %v1928_v17  ;;  %v2742_v46 = vpop.f32.mrf.mxu0 }
  0xd0   :  { %v162_v34 = vadd.f32 %v2617_v10, %v2742_v46 }
  0xd3   :  { %v2744_v47 = vpop.f32.mrf.mxu0 }
  0xd5   :  { %v2746_v48 = vpop.f32.mrf.mxu0 }
  0xd7   :  { %v2748_v49 = vpop.f32.mrf.mxu0 }
  0xd9   :  { %v2752_v51 = vpop.f32.mrf.mxu0 }
  0xda   :  { %v2361_v16 = vpop.eup %2360 }
  0xdb   :  { %281 = vrot.lane.b32.xlu0 %v2361_v16, %s2508_s22 }
  0xdc   :  { %v2363_v18 = vpop.eup %2362 }
  0xdd   :  { %v275_v19 = vadd.f32 1.0, %v2363_v18 }
  0xdf   :  { %2364 = vrcp.f32 %v275_v19 }
  0xec   :  { %v2365_v20 = vpop.eup %2364 }
  0xed   :  { %v279_v23 = vmul.f32 0.0, %v2365_v20 }
 0x14d   :  { %v282_v21 = vpop.permute.xlu0 %281 }
 0x14e   :  { %v284_v22 = vmul.f32 %v2365_v20, %v282_v21 }
 0x150   :  { %286 = vrot.lane.b32.xlu0 %v284_v22, %s2509_s23 }
 0x1c2   :  { %v287_v24 = vpop.permute.xlu0 %286 }
 0x1c3   :  { %v2622_v25 = vadd.f32 %v287_v24, %v279_v23 }
 0x1c5   :  { %2366 = vtanh.f32 %v2622_v25 }
 0x1d2   :  { %v2367_v37 = vpop.eup %2366 }
 0x1d3   :  { %292 = vrot.lane.b32.xlu1 %v2367_v37, %s2508_s22 }
 0x245   :  { %v293_v41 = vpop.permute.xlu1 %292 }
 0x246   :  { %v295_v42 = vmul.f32 %v2365_v20, %v293_v41 }
 0x248   :  { %297 = vrot.lane.b32.xlu1 %v295_v42, %s2509_s23 }
 0x2ba   :  { %v298_v43 = vpop.permute.xlu1 %297 }
 0x2bb   :  { %v300_v44 = vsel %vm197_vm2, %v298_v43, 0.0  ;;  %2144 = vmatmul.mubr.msk.f32.vlgmr.msra.gmra.mxu1 %vm197_vm2, %v298_v43 }
 0x2bc   :  { %2133 = vmatmul.mubr.msk.f32.vlgmr.msra.gmra.mxu0 %vm301_vm3, %v300_v44  ;;  %2147 = vmatpush3.msra.mxu1 %v2634_v28 }
 0x2bd   :  { %2148 = vmatprep.subr.mxu1 %v2506_v0  ;;  %2166 = vmatpush3.msra.mxu0 %v2562_v2 }
 0x2be   :  { %2149 = vmatpush3.msra.mxu1 %v2640_v29  ;;  %2167 = vmatprep.subr.mxu0 %v2506_v0 }
 0x2bf   :  { %2150 = vmatprep.subr.mxu1 %v2506_v0  ;;  %2168 = vmatpush3.msra.mxu0 %v2573_v4 }
 0x2c0   :  { %2151 = vmatpush3.msra.mxu1 %v2651_v31  ;;  %2169 = vmatprep.subr.mxu0 %v2506_v0 }
 0x2c1   :  { %2152 = vmatprep.subr.mxu1 %v2506_v0  ;;  %2170 = vmatpush3.msra.mxu0 %v2586_v7 }
 0x2c2   :  { %2153 = vmatpush3.msra.mxu1 %v2662_v33  ;;  %2171 = vmatprep.subr.mxu0 %v2506_v0 }
 0x2c3   :  { %2154 = vmatprep.subr.mxu1 %v2506_v0  ;;  %2172 = vmatpush3.msra.mxu0 %v2594_v8 }
 0x2c4   :  { %2155 = vmatpush3.msra.mxu1 %v2673_v35  ;;  %2173 = vmatprep.mubr.msk.f32.mxu0 %vm2507_vm0, %v2506_v0 }
 0x2c5   :  { %2156 = vmatprep.subr.mxu1 %v2506_v0  ;;  %2162 = vmatprep.mubr.msk.f32.mxu1 %vm2507_vm0, %v2506_v0 }
 0x2c6   :  { %2157 = vmatpush3.msra.mxu1 %v2685_v38  ;;  %2176 = vmatprep.subr.mxu0 %v2506_v0 }
 0x2c7   :  { %2158 = vmatprep.subr.mxu1 %v2506_v0 }
 0x2c8   :  { %2159 = vmatpush3.msra.mxu1 %v2693_v39 }
 0x2c9   :  { %2160 = vmatprep.subr.mxu1 %v2506_v0 }
 0x2ca   :  { %2161 = vmatpush3.msra.mxu1 %v2702_v40 }
 0x2cb   :  { %2195 = vmatprep.subr.mxu1 %v2506_v0 }
 0x37b   :  { %v467_v53 = vpop.f32.mrf.mxu1 }
 0x37c   :  { %v471_v54 = vadd.f32 %v467_v53, %v157_v50  ;;  %v371_v55 = vpop.f32.mrf.mxu0 }
 0x37d   :  { %v372_v56 = vadd.f32 %v2757_v52, %v371_v55  ;;  %v2145_v57 = vpop.f32.mrf.mxu1 }
 0x37e   :  { %2368 = vtanh.f32 %v471_v54  ;;  %v2134_v58 = vpop.f32.mrf.mxu0  ;;  %v1932_v61 = vmul.f32 -1.442695, %v471_v54 }
 0x37f   :  { %2370 = vtanh.f32 %v372_v56  ;;  %v1930_v62 = vmul.f32 -1.442695, %v372_v56 }
 0x380   :  { %2372 = vpow2.f32 %v1932_v61 }
 0x381   :  { %2374 = vpow2.f32 %v1930_v62 }
 0x38b   :  { %v2369_v59 = vpop.eup %2368 }
 0x38c   :  { %v2371_v60 = vpop.eup %2370  ;;  %481 = vrot.lane.b32.xlu1 %v2369_v59, %s2508_s22 }
 0x38d   :  { %384 = vrot.lane.b32.xlu0 %v2371_v60, %s2508_s22  ;;  %v2373_v63 = vpop.eup %2372 }
 0x38e   :  { %v2375_v1 = vpop.eup %2374  ;;  %v475_v3 = vadd.f32 1.0, %v2373_v63 }
 0x38f   :  { %v378_v5 = vadd.f32 1.0, %v2375_v1 }
 0x390   :  { %2376 = vrcp.f32 %v475_v3 }
 0x391   :  { %2378 = vrcp.f32 %v378_v5 }
 0x39d   :  { %v2377_v6 = vpop.eup %2376 }
 0x39e   :  { %v2379_v11 = vpop.eup %2378  ;;  %v479_v15 = vmul.f32 %v2377_v6, %v2622_v25 }
 0x39f   :  { %v382_v17 = vmul.f32 0.0, %v2379_v11 }
 0x3fe   :  { %v482_v9 = vpop.permute.xlu1 %481 }
 0x3ff   :  { %v484_v12 = vmul.f32 %v2377_v6, %v482_v9  ;;  %v385_v13 = vpop.permute.xlu0 %384 }
 0x400   :  { %v387_v14 = vmul.f32 %v2379_v11, %v385_v13 }
 0x401   :  { %486 = vrot.lane.b32.xlu1 %v484_v12, %s2509_s23 }
 0x402   :  { %389 = vrot.lane.b32.xlu0 %v387_v14, %s2509_s23 }
 0x473   :  { %v487_v16 = vpop.permute.xlu1 %486 }
 0x474   :  { %v2765_v18 = vadd.f32 %v487_v16, %v479_v15  ;;  %v390_v19 = vpop.permute.xlu0 %389 }
 0x475   :  { %v2767_v20 = vadd.f32 %v390_v19, %v382_v17 }
 0x476   :  { %2380 = vtanh.f32 %v2765_v18 }
 0x477   :  { %2382 = vtanh.f32 %v2767_v20 }
 0x483   :  { %v2381_v21 = vpop.eup %2380 }
 0x484   :  { %v2383_v22 = vpop.eup %2382  ;;  %492 = vrot.lane.b32.xlu1 %v2381_v21, %s2508_s22 }
 0x485   :  { %395 = vrot.lane.b32.xlu0 %v2383_v22, %s2508_s22  ;;  %v167_v22 = vadd.f32 %v2740_v45, %v2617_v10 }
 0x4f6   :  { %v493_v23 = vpop.permute.xlu1 %492 }
 0x4f7   :  { %v495_v24 = vmul.f32 %v2377_v6, %v493_v23  ;;  %v396_v25 = vpop.permute.xlu0 %395 }
 0x4f8   :  { %v398_v26 = vmul.f32 %v2379_v11, %v396_v25 }
 0x4f9   :  { %497 = vrot.lane.b32.xlu0 %v495_v24, %s2509_s23 }
 0x4fa   :  { %501 = vrot.lane.b32.xlu1 %v398_v26, %s2508_s22 }
 0x56b   :  { %v498_v27 = vpop.permute.xlu0 %497 }
 0x56c   :  { %v502_v30 = vpop.permute.xlu1 %501  ;;  %2174 = vmatmul.mubr.msk.f32.vlgmr.msra.gmra.mxu0 %vm197_vm2, %v498_v27 }
 0x56d   :  { %v504_v32 = vsel %vm197_vm2, %v498_v27, %v502_v30  ;;  %2177 = vmatpush3.msra.mxu0 %v2634_v28  ;;  %2192 = vmatprep.mubr.msk.f32.mxu0 %vm2507_vm0, %v2506_v0 }
 0x56e   :  { %2163 = vmatmul.mubr.msk.f32.vlgmr.msra.gmra.mxu1 %vm301_vm3, %v504_v32  ;;  %2178 = vmatprep.subr.mxu0 %v2506_v0 }
 0x56f   :  { %2179 = vmatpush3.msra.mxu0 %v2640_v29  ;;  %2196 = vmatpush3.msra.mxu1 %v2562_v2 }
 0x570   :  { %2180 = vmatprep.subr.mxu0 %v2506_v0  ;;  %2197 = vmatprep.subr.mxu1 %v2506_v0 }
 0x571   :  { %2181 = vmatpush3.msra.mxu0 %v2651_v31  ;;  %2198 = vmatpush3.msra.mxu1 %v2573_v4 }
 0x572   :  { %2182 = vmatprep.subr.mxu0 %v2506_v0  ;;  %2199 = vmatprep.subr.mxu1 %v2506_v0 }
 0x573   :  { %2183 = vmatpush3.msra.mxu0 %v2662_v33  ;;  %2200 = vmatpush3.msra.mxu1 %v2586_v7 }
 0x574   :  { %2184 = vmatprep.subr.mxu0 %v2506_v0  ;;  %2201 = vmatprep.subr.mxu1 %v2506_v0 }
 0x575   :  { %2185 = vmatpush3.msra.mxu0 %v2673_v35  ;;  %2202 = vmatpush3.msra.mxu1 %v2594_v8 }
 0x576   :  { %2186 = vmatprep.subr.mxu0 %v2506_v0  ;;  %2203 = vmatprep.mubr.msk.f32.mxu1 %vm2507_vm0, %v2506_v0 }
 0x577   :  { %2187 = vmatpush3.msra.mxu0 %v2685_v38  ;;  %2206 = vmatprep.subr.mxu1 %v2506_v0 }
 0x578   :  { %2188 = vmatprep.subr.mxu0 %v2506_v0 }
 0x579   :  { %2189 = vmatpush3.msra.mxu0 %v2693_v39 }
 0x57a   :  { %2190 = vmatprep.subr.mxu0 %v2506_v0 }
 0x57b   :  { %2191 = vmatpush3.msra.mxu0 %v2702_v40 }
 0x57c   :  { %2225 = vmatprep.subr.mxu0 %v2506_v0 }
 0x62c   :  { %v670_v36 = vpop.f32.mrf.mxu0 }
 0x62d   :  { %v674_v37 = vadd.f32 %v670_v36, %v162_v34 }
 0x62e   :  { %v574_v41 = vpop.f32.mrf.mxu1  ;;  %v2175_v42 = vpop.f32.mrf.mxu0 }
 0x62f   :  { %2384 = vtanh.f32 %v674_v37  ;;  %v575_v43 = vadd.f32 %v2757_v52, %v574_v41  ;;  %v1936_v54 = vmul.f32 -1.442695, %v674_v37 }
 0x630   :  { %v2164_v44 = vpop.f32.mrf.mxu1 }
 0x631   :  { %2386 = vtanh.f32 %v575_v43  ;;  %v1934_v55 = vmul.f32 -1.442695, %v575_v43 }
 0x632   :  { %2388 = vpow2.f32 %v1936_v54 }
 0x633   :  { %2390 = vpow2.f32 %v1934_v55 }
 0x63c   :  { %v2385_v50 = vpop.eup %2384 }
 0x63d   :  { %684 = vrot.lane.b32.xlu1 %v2385_v50, %s2508_s22 }
 0x63e   :  { %v2387_v53 = vpop.eup %2386 }
 0x63f   :  { %587 = vrot.lane.b32.xlu0 %v2387_v53, %s2508_s22  ;;  %v2389_v46 = vpop.eup %2388 }
 0x640   :  { %v2391_v56 = vpop.eup %2390  ;;  %v678_v57 = vadd.f32 1.0, %v2389_v46 }
 0x641   :  { %v581_v58 = vadd.f32 1.0, %v2391_v56 }
 0x642   :  { %2392 = vrcp.f32 %v678_v57 }
 0x643   :  { %2394 = vrcp.f32 %v581_v58 }
 0x64f   :  { %v2393_v59 = vpop.eup %2392 }
 0x650   :  { %v2395_v62 = vpop.eup %2394  ;;  %v682_v3 = vmul.f32 %v2393_v59, %v2765_v18 }
 0x651   :  { %v585_v9 = vmul.f32 %v2395_v62, %v2767_v20 }
 0x6af   :  { %v685_v60 = vpop.permute.xlu1 %684 }
 0x6b0   :  { %v687_v61 = vmul.f32 %v2393_v59, %v685_v60 }
 0x6b1   :  { %v588_v63 = vpop.permute.xlu0 %587 }
 0x6b2   :  { %689 = vrot.lane.b32.xlu1 %v687_v61, %s2509_s23  ;;  %v590_v1 = vmul.f32 %v2395_v62, %v588_v63 }
 0x6b4   :  { %592 = vrot.lane.b32.xlu0 %v590_v1, %s2509_s23 }
 0x724   :  { %v690_v5 = vpop.permute.xlu1 %689 }
 0x725   :  { %v2814_v6 = vadd.f32 %v690_v5, %v682_v3 }
 0x726   :  { %v593_v11 = vpop.permute.xlu0 %592 }
 0x727   :  { %2396 = vtanh.f32 %v2814_v6  ;;  %v2818_v12 = vadd.f32 %v593_v11, %v585_v9 }
 0x729   :  { %2398 = vtanh.f32 %v2818_v12 }
 0x734   :  { %v2397_v13 = vpop.eup %2396 }
 0x735   :  { %695 = vrot.lane.b32.xlu1 %v2397_v13, %s2508_s22  ;;  %v172_v13 = vadd.f32 %v2617_v10, %v2746_v48 }
 0x736   :  { %v2399_v14 = vpop.eup %2398 }
 0x737   :  { %598 = vrot.lane.b32.xlu0 %v2399_v14, %s2508_s22 }
 0x7a7   :  { %v696_v15 = vpop.permute.xlu1 %695 }
 0x7a8   :  { %v698_v16 = vmul.f32 %v2393_v59, %v696_v15 }
 0x7a9   :  { %v599_v17 = vpop.permute.xlu0 %598 }
 0x7aa   :  { %700 = vrot.lane.b32.xlu0 %v698_v16, %s2509_s23  ;;  %v601_v18 = vmul.f32 %v2395_v62, %v599_v17 }
 0x7ac   :  { %704 = vrot.lane.b32.xlu1 %v601_v18, %s2508_s22 }
 0x81c   :  { %v701_v19 = vpop.permute.xlu0 %700 }
 0x81d   :  { %2204 = vmatmul.mubr.msk.f32.vlgmr.msra.gmra.mxu1 %vm197_vm2, %v701_v19 }
 0x81e   :  { %2207 = vmatpush3.msra.mxu1 %v2634_v28  ;;  %2222 = vmatprep.mubr.msk.f32.mxu1 %vm2507_vm0, %v2506_v0  ;;  %v705_v20 = vpop.permute.xlu1 %704 }
 0x81f   :  { %2208 = vmatprep.subr.mxu1 %v2506_v0  ;;  %v707_v21 = vsel %vm197_vm2, %v701_v19, %v705_v20 }
 0x820   :  { %2209 = vmatpush3.msra.mxu1 %v2640_v29  ;;  %2193 = vmatmul.mubr.msk.f32.vlgmr.msra.gmra.mxu0 %vm301_vm3, %v707_v21 }
 0x821   :  { %2210 = vmatprep.subr.mxu1 %v2506_v0  ;;  %2226 = vmatpush3.msra.mxu0 %v2562_v2 }
 0x822   :  { %2211 = vmatpush3.msra.mxu1 %v2651_v31  ;;  %2227 = vmatprep.subr.mxu0 %v2506_v0 }
 0x823   :  { %2212 = vmatprep.subr.mxu1 %v2506_v0  ;;  %2228 = vmatpush3.msra.mxu0 %v2573_v4 }
 0x824   :  { %2213 = vmatpush3.msra.mxu1 %v2662_v33  ;;  %2229 = vmatprep.subr.mxu0 %v2506_v0 }
 0x825   :  { %2214 = vmatprep.subr.mxu1 %v2506_v0  ;;  %2230 = vmatpush3.msra.mxu0 %v2586_v7 }
 0x826   :  { %2215 = vmatpush3.msra.mxu1 %v2673_v35  ;;  %2231 = vmatprep.subr.mxu0 %v2506_v0 }
 0x827   :  { %2216 = vmatprep.subr.mxu1 %v2506_v0  ;;  %2232 = vmatpush3.msra.mxu0 %v2594_v8 }
 0x828   :  { %2217 = vmatpush3.msra.mxu1 %v2685_v38  ;;  %2233 = vmatprep.mubr.msk.f32.mxu0 %vm2507_vm0, %v2506_v0 }
 0x829   :  { %2218 = vmatprep.subr.mxu1 %v2506_v0  ;;  %2236 = vmatprep.subr.mxu0 %v2506_v0 }
 0x82a   :  { %2219 = vmatpush3.msra.mxu1 %v2693_v39 }
 0x82b   :  { %2220 = vmatprep.subr.mxu1 %v2506_v0 }
 0x82c   :  { %2221 = vmatpush3.msra.mxu1 %v2702_v40 }
 0x82d   :  { %2255 = vmatprep.subr.mxu1 %v2506_v0 }
 0x8dd   :  { %v873_v23 = vpop.f32.mrf.mxu1 }
 0x8de   :  { %v877_v24 = vadd.f32 %v873_v23, %v167_v22 }
 0x8df   :  { %v2205_v25 = vpop.f32.mrf.mxu1 }
 0x8e0   :  { %2400 = vtanh.f32 %v877_v24  ;;  %v777_v26 = vpop.f32.mrf.mxu0  ;;  %v1940_v36 = vmul.f32 -1.442695, %v877_v24 }
 0x8e1   :  { %v778_v27 = vadd.f32 %v2757_v52, %v777_v26 }
 0x8e2   :  { %v2194_v30 = vpop.f32.mrf.mxu0 }
 0x8e3   :  { %2402 = vtanh.f32 %v778_v27  ;;  %v1938_v37 = vmul.f32 -1.442695, %v778_v27 }
 0x8e4   :  { %2404 = vpow2.f32 %v1940_v36 }
 0x8e5   :  { %2406 = vpow2.f32 %v1938_v37 }
 0x8ed   :  { %v2401_v32 = vpop.eup %2400 }
 0x8ee   :  { %887 = vrot.lane.b32.xlu1 %v2401_v32, %s2508_s22 }
 0x8f0   :  { %v2403_v34 = vpop.eup %2402 }
 0x8f1   :  { %790 = vrot.lane.b32.xlu0 %v2403_v34, %s2508_s22  ;;  %v2405_v45 = vpop.eup %2404 }
 0x8f2   :  { %v881_v41 = vadd.f32 1.0, %v2405_v45  ;;  %v2407_v42 = vpop.eup %2406 }
 0x8f3   :  { %v784_v43 = vadd.f32 1.0, %v2407_v42 }
 0x8f4   :  { %2408 = vrcp.f32 %v881_v41 }
 0x8f5   :  { %2410 = vrcp.f32 %v784_v43 }
 0x901   :  { %v2409_v44 = vpop.eup %2408 }
 0x902   :  { %v2411_v54 = vpop.eup %2410  ;;  %v885_v56 = vmul.f32 %v2409_v44, %v2814_v6 }
 0x903   :  { %v788_v59 = vmul.f32 %v2411_v54, %v2818_v12 }
 0x960   :  { %v888_v50 = vpop.permute.xlu1 %887 }
 0x961   :  { %v890_v53 = vmul.f32 %v2409_v44, %v888_v50 }
 0x963   :  { %892 = vrot.lane.b32.xlu1 %v890_v53, %s2509_s23  ;;  %v791_v55 = vpop.permute.xlu0 %790 }
 0x964   :  { %v793_v46 = vmul.f32 %v2411_v54, %v791_v55 }
 0x966   :  { %795 = vrot.lane.b32.xlu0 %v793_v46, %s2509_s23 }
 0x9d5   :  { %v893_v57 = vpop.permute.xlu1 %892 }
 0x9d6   :  { %v2864_v58 = vadd.f32 %v893_v57, %v885_v56 }
 0x9d8   :  { %2412 = vtanh.f32 %v2864_v58  ;;  %v796_v60 = vpop.permute.xlu0 %795 }
 0x9d9   :  { %v2868_v61 = vadd.f32 %v796_v60, %v788_v59 }
 0x9db   :  { %2414 = vtanh.f32 %v2868_v61 }
 0x9e5   :  { %v2413_v62 = vpop.eup %2412 }
 0x9e6   :  { %898 = vrot.lane.b32.xlu1 %v2413_v62, %s2508_s22 }
 0x9e8   :  { %v2415_v63 = vpop.eup %2414 }
 0x9e9   :  { %801 = vrot.lane.b32.xlu0 %v2415_v63, %s2508_s22 }
 0xa58   :  { %v899_v1 = vpop.permute.xlu1 %898 }
 0xa59   :  { %v901_v3 = vmul.f32 %v2409_v44, %v899_v1 }
 0xa5b   :  { %903 = vrot.lane.b32.xlu0 %v901_v3, %s2509_s23  ;;  %v802_v5 = vpop.permute.xlu0 %801 }
 0xa5c   :  { %v804_v6 = vmul.f32 %v2411_v54, %v802_v5 }
 0xa5e   :  { %907 = vrot.lane.b32.xlu1 %v804_v6, %s2508_s22 }
 0xacd   :  { %v904_v9 = vpop.permute.xlu0 %903 }
 0xace   :  { %2234 = vmatmul.mubr.msk.f32.vlgmr.msra.gmra.mxu0 %vm197_vm2, %v904_v9 }
 0xacf   :  { %2237 = vmatpush3.msra.mxu0 %v2634_v28  ;;  %2252 = vmatprep.mubr.msk.f32.mxu0 %vm2507_vm0, %v2506_v0 }
 0xad0   :  { %2238 = vmatprep.subr.mxu0 %v2506_v0  ;;  %v908_v11 = vpop.permute.xlu1 %907 }
 0xad1   :  { %2239 = vmatpush3.msra.mxu0 %v2640_v29  ;;  %v910_v12 = vsel %vm197_vm2, %v904_v9, %v908_v11 }
 0xad2   :  { %2240 = vmatprep.subr.mxu0 %v2506_v0  ;;  %2223 = vmatmul.mubr.msk.f32.vlgmr.msra.gmra.mxu1 %vm301_vm3, %v910_v12 }
 0xad3   :  { %2241 = vmatpush3.msra.mxu0 %v2651_v31  ;;  %2256 = vmatpush3.msra.mxu1 %v2562_v2 }
 0xad4   :  { %2242 = vmatprep.subr.mxu0 %v2506_v0  ;;  %2257 = vmatprep.subr.mxu1 %v2506_v0 }
 0xad5   :  { %2243 = vmatpush3.msra.mxu0 %v2662_v33  ;;  %2258 = vmatpush3.msra.mxu1 %v2573_v4 }
 0xad6   :  { %2244 = vmatprep.subr.mxu0 %v2506_v0  ;;  %2259 = vmatprep.subr.mxu1 %v2506_v0 }
 0xad7   :  { %2245 = vmatpush3.msra.mxu0 %v2673_v35  ;;  %2260 = vmatpush3.msra.mxu1 %v2586_v7 }
 0xad8   :  { %2246 = vmatprep.subr.mxu0 %v2506_v0  ;;  %2261 = vmatprep.subr.mxu1 %v2506_v0 }
 0xad9   :  { %2263 = vmatprep.mubr.msk.f32.mxu1 %vm2507_vm0, %v2506_v0  ;;  %2262 = vmatpush3.msra.mxu1 %v2594_v8 }
 0xada   :  { %2247 = vmatpush3.msra.mxu0 %v2685_v38  ;;  %2266 = vmatprep.subr.mxu1 %v2506_v0 }
 0xadb   :  { %2248 = vmatprep.subr.mxu0 %v2506_v0 }
 0xadc   :  { %2249 = vmatpush3.msra.mxu0 %v2693_v39 }
 0xadd   :  { %2250 = vmatprep.subr.mxu0 %v2506_v0 }
 0xade   :  { %2251 = vmatpush3.msra.mxu0 %v2702_v40 }
 0xadf   :  { %2285 = vmatprep.subr.mxu0 %v2506_v0 }
 0xb8e   :  { %v1076_v14 = vpop.f32.mrf.mxu0 }
 0xb8f   :  { %v1080_v15 = vadd.f32 %v1076_v14, %v172_v13 }
 0xb90   :  { %v2235_v16 = vpop.f32.mrf.mxu0 }
 0xb91   :  { %2416 = vtanh.f32 %v1080_v15  ;;  %v1944_v22 = vmul.f32 -1.442695, %v1080_v15 }
 0xb92   :  { %v980_v17 = vpop.f32.mrf.mxu1 }
 0xb93   :  { %v981_v18 = vadd.f32 %v2757_v52, %v980_v17 }
 0xb94   :  { %v2224_v19 = vpop.f32.mrf.mxu1 }
 0xb95   :  { %2418 = vtanh.f32 %v981_v18  ;;  %v1942_v23 = vmul.f32 -1.442695, %v981_v18 }
 0xb96   :  { %2420 = vpow2.f32 %v1944_v22 }
 0xb97   :  { %2422 = vpow2.f32 %v1942_v23 }
 0xb9e   :  { %v2417_v20 = vpop.eup %2416 }
 0xb9f   :  { %1090 = vrot.lane.b32.xlu1 %v2417_v20, %s2508_s22 }
 0xba2   :  { %v2419_v21 = vpop.eup %2418 }
 0xba3   :  { %993 = vrot.lane.b32.xlu0 %v2419_v21, %s2508_s22  ;;  %v2421_v48 = vpop.eup %2420 }
 0xba4   :  { %v1084_v24 = vadd.f32 1.0, %v2421_v48  ;;  %v2423_v25 = vpop.eup %2422 }
 0xba5   :  { %v987_v26 = vadd.f32 1.0, %v2423_v25 }
 0xba6   :  { %2424 = vrcp.f32 %v1084_v24 }
 0xba7   :  { %2426 = vrcp.f32 %v987_v26 }
 0xbb3   :  { %v2425_v27 = vpop.eup %2424 }
 0xbb4   :  { %v2427_v34 = vpop.eup %2426  ;;  %v1088_v45 = vmul.f32 %v2425_v27, %v2864_v58 }
 0xbb5   :  { %v991_v43 = vmul.f32 %v2427_v34, %v2868_v61 }
 0xc11   :  { %v1091_v30 = vpop.permute.xlu1 %1090 }
 0xc12   :  { %v1093_v32 = vmul.f32 %v2425_v27, %v1091_v30 }
 0xc14   :  { %1095 = vrot.lane.b32.xlu1 %v1093_v32, %s2509_s23 }
 0xc15   :  { %v994_v36 = vpop.permute.xlu0 %993 }
 0xc16   :  { %v996_v37 = vmul.f32 %v2427_v34, %v994_v36 }
 0xc18   :  { %998 = vrot.lane.b32.xlu0 %v996_v37, %s2509_s23 }
 0xc86   :  { %v1096_v41 = vpop.permute.xlu1 %1095 }
 0xc87   :  { %v2914_v42 = vadd.f32 %v1096_v41, %v1088_v45 }
 0xc89   :  { %2428 = vtanh.f32 %v2914_v42 }
 0xc8a   :  { %v999_v44 = vpop.permute.xlu0 %998 }
 0xc8b   :  { %v2918_v50 = vadd.f32 %v999_v44, %v991_v43 }
 0xc8d   :  { %2430 = vtanh.f32 %v2918_v50 }
 0xc96   :  { %v2429_v53 = vpop.eup %2428 }
 0xc97   :  { %1101 = vrot.lane.b32.xlu1 %v2429_v53, %s2508_s22 }
 0xc9a   :  { %v2431_v54 = vpop.eup %2430 }
 0xc9b   :  { %1004 = vrot.lane.b32.xlu0 %v2431_v54, %s2508_s22 }
 0xd09   :  { %v1102_v55 = vpop.permute.xlu1 %1101 }
 0xd0a   :  { %v1104_v46 = vmul.f32 %v2425_v27, %v1102_v55 }
 0xd0c   :  { %1106 = vrot.lane.b32.xlu0 %v1104_v46, %s2509_s23 }
 0xd0d   :  { %v1005_v56 = vpop.permute.xlu0 %1004 }
 0xd0e   :  { %v1007_v57 = vmul.f32 %v2427_v34, %v1005_v56 }
 0xd10   :  { %1110 = vrot.lane.b32.xlu1 %v1007_v57, %s2508_s22 }
 0xd7e   :  { %v1107_v58 = vpop.permute.xlu0 %1106 }
 0xd7f   :  { %2264 = vmatmul.mubr.msk.f32.vlgmr.msra.gmra.mxu1 %vm197_vm2, %v1107_v58 }
 0xd80   :  { %2267 = vmatpush3.msra.mxu1 %v2634_v28  ;;  %2282 = vmatprep.mubr.msk.f32.mxu1 %vm2507_vm0, %v2506_v0 }
 0xd81   :  { %2268 = vmatprep.subr.mxu1 %v2506_v0 }
 0xd82   :  { %2269 = vmatpush3.msra.mxu1 %v2640_v29  ;;  %v1111_v59 = vpop.permute.xlu1 %1110 }
 0xd83   :  { %2270 = vmatprep.subr.mxu1 %v2506_v0  ;;  %v1113_v60 = vsel %vm197_vm2, %v1107_v58, %v1111_v59 }
 0xd84   :  { %2271 = vmatpush3.msra.mxu1 %v2651_v31  ;;  %2253 = vmatmul.mubr.msk.f32.vlgmr.msra.gmra.mxu0 %vm301_vm3, %v1113_v60 }
 0xd85   :  { %2272 = vmatprep.subr.mxu1 %v2506_v0  ;;  %2286 = vmatpush3.msra.mxu0 %v2562_v2  ;;  %v177_v2 = vadd.f32 %v2744_v47, %v2617_v10 }
 0xd86   :  { %2273 = vmatpush3.msra.mxu1 %v2662_v33  ;;  %2287 = vmatprep.subr.mxu0 %v2506_v0 }
 0xd87   :  { %2274 = vmatprep.subr.mxu1 %v2506_v0  ;;  %2288 = vmatpush3.msra.mxu0 %v2573_v4 }
 0xd88   :  { %2275 = vmatpush3.msra.mxu1 %v2673_v35  ;;  %2289 = vmatprep.subr.mxu0 %v2506_v0 }
 0xd89   :  { %2293 = vmatprep.mubr.msk.f32.mxu0 %vm2507_vm0, %v2506_v0  ;;  %2290 = vmatpush3.msra.mxu0 %v2586_v7 }
 0xd8a   :  { %2276 = vmatprep.subr.mxu1 %v2506_v0  ;;  %2291 = vmatprep.subr.mxu0 %v2506_v0 }
 0xd8b   :  { %2277 = vmatpush3.msra.mxu1 %v2685_v38  ;;  %2292 = vmatpush3.msra.mxu0 %v2594_v8 }
 0xd8c   :  { %2278 = vmatprep.subr.mxu1 %v2506_v0  ;;  %2296 = vmatprep.subr.mxu0 %v2506_v0 }
 0xd8d   :  { %2279 = vmatpush3.msra.mxu1 %v2693_v39 }
 0xd8e   :  { %2280 = vmatprep.subr.mxu1 %v2506_v0 }
 0xd8f   :  { %2281 = vmatpush3.msra.mxu1 %v2702_v40 }
 0xd90   :  { %2315 = vmatprep.subr.mxu1 %v2506_v0 }
 0xe3f   :  { %v1279_v4 = vpop.f32.mrf.mxu1 }
 0xe40   :  { %v1283_v7 = vadd.f32 %v1279_v4, %v177_v2 }
 0xe41   :  { %v2265_v61 = vpop.f32.mrf.mxu1 }
 0xe42   :  { %2432 = vtanh.f32 %v1283_v7  ;;  %v1948_v5 = vmul.f32 -1.442695, %v1283_v7 }
 0xe44   :  { %v1183_v8 = vpop.f32.mrf.mxu0 }
 0xe45   :  { %v1184_v62 = vadd.f32 %v2757_v52, %v1183_v8 }
 0xe46   :  { %v2254_v63 = vpop.f32.mrf.mxu0 }
 0xe47   :  { %2434 = vtanh.f32 %v1184_v62  ;;  %v1946_v6 = vmul.f32 -1.442695, %v1184_v62 }
 0xe48   :  { %2436 = vpow2.f32 %v1948_v5 }
 0xe49   :  { %2438 = vpow2.f32 %v1946_v6 }
 0xe4f   :  { %v2433_v1 = vpop.eup %2432 }
 0xe50   :  { %1293 = vrot.lane.b32.xlu1 %v2433_v1, %s2508_s22 }
 0xe54   :  { %v2435_v3 = vpop.eup %2434 }
 0xe55   :  { %1196 = vrot.lane.b32.xlu0 %v2435_v3, %s2508_s22  ;;  %v2437_v47 = vpop.eup %2436 }
 0xe56   :  { %v1287_v9 = vadd.f32 1.0, %v2437_v47  ;;  %v2439_v11 = vpop.eup %2438 }
 0xe57   :  { %v1190_v12 = vadd.f32 1.0, %v2439_v11  ;;  %v2496_v11 = vld [vmem:[%s3121_s4 + $0x38] sm:$0xff] }
 0xe58   :  { %2440 = vrcp.f32 %v1287_v9 }
 0xe59   :  { %2442 = vrcp.f32 %v1190_v12  ;;  %v2497_v12 = vld [vmem:[%s3121_s4 + $0x30] sm:$0xff] }
 0xe65   :  { %v2441_v13 = vpop.eup %2440 }
 0xe66   :  { %v2443_v16 = vpop.eup %2442  ;;  %v1291_v19 = vmul.f32 %v2441_v13, %v2914_v42 }
 0xe67   :  { %v1194_v22 = vmul.f32 %v2443_v16, %v2918_v50 }
 0xec2   :  { %v1294_v14 = vpop.permute.xlu1 %1293 }
 0xec3   :  { %v1296_v15 = vmul.f32 %v2441_v13, %v1294_v14 }
 0xec5   :  { %1298 = vrot.lane.b32.xlu1 %v1296_v15, %s2509_s23 }
 0xec7   :  { %v1197_v17 = vpop.permute.xlu0 %1196 }
 0xec8   :  { %v1199_v18 = vmul.f32 %v2443_v16, %v1197_v17  ;;  %v2500_v17 = vld [vmem:[%s3121_s4 + $0x18] sm:$0xff] }
 0xeca   :  { %1201 = vrot.lane.b32.xlu0 %v1199_v18, %s2509_s23  ;;  %v2501_v18 = vld [vmem:[%s3121_s4 + $0x10] sm:$0xff] }
 0xf37   :  { %v1299_v20 = vpop.permute.xlu1 %1298 }
 0xf38   :  { %v2964_v21 = vadd.f32 %v1299_v20, %v1291_v19  ;;  %v2502_v19 = vld [vmem:[%s3121_s4 + $0x8] sm:$0xff]  ;;  %v2503_v20 = vld [vmem:[%s3121_s4] sm:$0xff] }
 0xf3a   :  { %2444 = vtanh.f32 %v2964_v21 }
 0xf3c   :  { %v1202_v23 = vpop.permute.xlu0 %1201 }
 0xf3d   :  { %v2968_v48 = vadd.f32 %v1202_v23, %v1194_v22 }
 0xf3f   :  { %2446 = vtanh.f32 %v2968_v48 }
 0xf47   :  { %v2445_v24 = vpop.eup %2444 }
 0xf48   :  { %1304 = vrot.lane.b32.xlu1 %v2445_v24, %s2508_s22 }
 0xf4c   :  { %v2447_v25 = vpop.eup %2446 }
 0xf4d   :  { %1207 = vrot.lane.b32.xlu0 %v2447_v25, %s2508_s22 }
 0xfba   :  { %v1305_v26 = vpop.permute.xlu1 %1304 }
 0xfbb   :  { %v1307_v27 = vmul.f32 %v2441_v13, %v1305_v26  ;;  %v2498_v13 = vld [vmem:[%s3121_s4 + $0x28] sm:$0xff] }
 0xfbd   :  { %1309 = vrot.lane.b32.xlu0 %v1307_v27, %s2509_s23 }
 0xfbf   :  { %v1208_v30 = vpop.permute.xlu0 %1207 }
 0xfc0   :  { %v1210_v32 = vmul.f32 %v2443_v16, %v1208_v30  ;;  %v2499_v16 = vld [vmem:[%s3121_s4 + $0x20] sm:$0xff] }
 0xfc2   :  { %1313 = vrot.lane.b32.xlu1 %v1210_v32, %s2508_s22 }
0x102f   :  { %v1310_v34 = vpop.permute.xlu0 %1309 }
0x1030   :  { %2294 = vmatmul.mubr.msk.f32.vlgmr.msra.gmra.mxu0 %vm197_vm2, %v1310_v34 }
0x1031   :  { %2297 = vmatpush3.msra.mxu0 %v2634_v28  ;;  %2312 = vmatprep.mubr.msk.f32.mxu0 %vm2507_vm0, %v2506_v0  ;;  %v2492_v28 = vld [vmem:[%s3118_s2 + $0x18] sm:$0xff] }
0x1032   :  { %2298 = vmatprep.subr.mxu0 %v2506_v0 }
0x1033   :  { %2299 = vmatpush3.msra.mxu0 %v2640_v29  ;;  %v2493_v29 = vld [vmem:[%s3118_s2 + $0x10] sm:$0xff] }
0x1034   :  { %2300 = vmatprep.subr.mxu0 %v2506_v0  ;;  %v1314_v36 = vpop.permute.xlu1 %1313 }
0x1035   :  { %2301 = vmatpush3.msra.mxu0 %v2651_v31  ;;  %v1316_v37 = vsel %vm197_vm2, %v1310_v34, %v1314_v36  ;;  %v2494_v31 = vld [vmem:[%s3118_s2 + $0x8] sm:$0xff] }
0x1036   :  { %2302 = vmatprep.subr.mxu0 %v2506_v0  ;;  %2283 = vmatmul.mubr.msk.f32.vlgmr.msra.gmra.mxu1 %vm301_vm3, %v1316_v37 }
0x1037   :  { %2303 = vmatpush3.msra.mxu0 %v2662_v33  ;;  %2316 = vmatpush3.msra.mxu1 %v2492_v28  ;;  %v2495_v33 = vld [vmem:[%s3118_s2] sm:$0xff] }
0x1038   :  { %2304 = vmatprep.subr.mxu0 %v2506_v0  ;;  %2317 = vmatprep.subr.mxu1 %v2506_v0 }
0x1039   :  { %2323 = vmatprep.mubr.msk.f32.mxu1 %vm2507_vm0, %v2506_v0  ;;  %2318 = vmatpush3.msra.mxu1 %v2493_v29 }
0x103a   :  { %2305 = vmatpush3.msra.mxu0 %v2673_v35  ;;  %2319 = vmatprep.subr.mxu1 %v2506_v0  ;;  %v182_v35 = vadd.f32 %v2617_v10, %v2752_v51 }
0x103b   :  { %2306 = vmatprep.subr.mxu0 %v2506_v0  ;;  %2320 = vmatpush3.msra.mxu1 %v2494_v31 }
0x103c   :  { %2307 = vmatpush3.msra.mxu0 %v2685_v38  ;;  %2321 = vmatprep.subr.mxu1 %v2506_v0 }
0x103d   :  { %2308 = vmatprep.subr.mxu0 %v2506_v0  ;;  %2322 = vmatpush3.msra.mxu1 %v2495_v33 }
0x103e   :  { %2309 = vmatpush3.msra.mxu0 %v2693_v39  ;;  %2326 = vmatprep.subr.mxu1 %v2506_v0 }
0x103f   :  { %2310 = vmatprep.subr.mxu0 %v2506_v0 }
0x1040   :  { %2311 = vmatpush3.msra.mxu0 %v2702_v40 }
0x1041   :  { %2345 = vmatprep.subr.mxu0 %v2506_v0 }
0x10f0   :  { %v1482_v38 = vpop.f32.mrf.mxu0 }
0x10f1   :  { %v1486_v45 = vadd.f32 %v1482_v38, %v182_v35 }
0x10f2   :  { %v2295_v41 = vpop.f32.mrf.mxu0 }
0x10f3   :  { %2448 = vtanh.f32 %v1486_v45  ;;  %v1952_v40 = vmul.f32 -1.442695, %v1486_v45 }
0x10f6   :  { %v1386_v42 = vpop.f32.mrf.mxu1 }
0x10f7   :  { %v1387_v43 = vadd.f32 %v2757_v52, %v1386_v42 }
0x10f8   :  { %v2284_v44 = vpop.f32.mrf.mxu1 }
0x10f9   :  { %2450 = vtanh.f32 %v1387_v43  ;;  %v1950_v53 = vmul.f32 -1.442695, %v1387_v43 }
0x10fa   :  { %2452 = vpow2.f32 %v1952_v40 }
0x10fb   :  { %2454 = vpow2.f32 %v1950_v53 }
0x1100   :  { %v2449_v39 = vpop.eup %2448 }
0x1101   :  { %1496 = vrot.lane.b32.xlu1 %v2449_v39, %s2508_s22 }
0x1106   :  { %v2451_v50 = vpop.eup %2450 }
0x1107   :  { %1399 = vrot.lane.b32.xlu0 %v2451_v50, %s2508_s22  ;;  %v2453_v10 = vpop.eup %2452 }
0x1108   :  { %v1490_v51 = vadd.f32 1.0, %v2453_v10  ;;  %v2455_v54 = vpop.eup %2454 }
0x1109   :  { %v1393_v55 = vadd.f32 1.0, %v2455_v54 }
0x110a   :  { %2456 = vrcp.f32 %v1490_v51 }
0x110b   :  { %2458 = vrcp.f32 %v1393_v55 }
0x1117   :  { %v2457_v46 = vpop.eup %2456 }
0x1118   :  { %v2459_v58 = vpop.eup %2458  ;;  %v1494_v2 = vmul.f32 %v2457_v46, %v2964_v21  ;;  %v2504_v21 = vld [vmem:[%s3120_s3] ss:$0 sm:$0xff] }
0x1119   :  { %v1397_v61 = vmul.f32 %v2459_v58, %v2968_v48  ;;  %v187_v22 = vadd.f32 %v2504_v21, %v2748_v49 }
0x1173   :  { %v1497_v56 = vpop.permute.xlu1 %1496 }
0x1174   :  { %v1499_v57 = vmul.f32 %v2457_v46, %v1497_v56 }
0x1176   :  { %1501 = vrot.lane.b32.xlu1 %v1499_v57, %s2509_s23 }
0x1179   :  { %v1400_v59 = vpop.permute.xlu0 %1399 }
0x117a   :  { %v1402_v60 = vmul.f32 %v2459_v58, %v1400_v59  ;;  %v2505_v59 = vld [vmem:[%s3122_s5] ss:$0 sm:$0xff] }
0x117c   :  { %1404 = vrot.lane.b32.xlu0 %v1402_v60, %s2509_s23 }
0x11e8   :  { %v1502_v4 = vpop.permute.xlu1 %1501 }
0x11e9   :  { %v3022_v7 = vadd.f32 %v1502_v4, %v1494_v2 }
0x11eb   :  { %2460 = vtanh.f32 %v3022_v7 }
0x11ee   :  { %v1405_v8 = vpop.permute.xlu0 %1404 }
0x11ef   :  { %v3026_v62 = vadd.f32 %v1405_v8, %v1397_v61 }
0x11f1   :  { %2462 = vtanh.f32 %v3026_v62 }
0x11f8   :  { %v2461_v63 = vpop.eup %2460 }
0x11f9   :  { %1507 = vrot.lane.b32.xlu1 %v2461_v63, %s2508_s22 }
0x11fe   :  { %v2463_v1 = vpop.eup %2462 }
0x11ff   :  { %1410 = vrot.lane.b32.xlu0 %v2463_v1, %s2508_s22 }
0x126b   :  { %v1508_v3 = vpop.permute.xlu1 %1507 }
0x126c   :  { %v1510_v5 = vmul.f32 %v2457_v46, %v1508_v3 }
0x126e   :  { %1512 = vrot.lane.b32.xlu0 %v1510_v5, %s2509_s23 }
0x1271   :  { %v1411_v6 = vpop.permute.xlu0 %1410 }
0x1272   :  { %v1413_v47 = vmul.f32 %v2459_v58, %v1411_v6 }
0x1274   :  { %1516 = vrot.lane.b32.xlu1 %v1413_v47, %s2508_s22  ;;  %v1823_v47 = vld [vmem:[%s3123_s6 + $0x18] sm:$0xff] }
0x12e0   :  { %v1513_v9 = vpop.permute.xlu0 %1512 }
0x12e1   :  { %2324 = vmatmul.mubr.msk.f32.vlgmr.msra.gmra.mxu1 %vm197_vm2, %v1513_v9 }
0x12e2   :  { %2327 = vmatpush3.msra.mxu1 %v2496_v11  ;;  %2342 = vmatprep.mubr.msk.f32.mxu1 %vm2507_vm0, %v2506_v0  ;;  %v1821_v11 = vld [vmem:[%s3123_s6 + $0x8] sm:$0xff] }
0x12e3   :  { %2328 = vmatprep.subr.mxu1 %v2506_v0 }
0x12e4   :  { %2329 = vmatpush3.msra.mxu1 %v2497_v12  ;;  %v1820_v12 = vld [vmem:[%s3123_s6] sm:$0xff] }
0x12e5   :  { %2330 = vmatprep.subr.mxu1 %v2506_v0 }
0x12e6   :  { %2331 = vmatpush3.msra.mxu1 %v2498_v13  ;;  %v1517_v14 = vpop.permute.xlu1 %1516 }
0x12e7   :  { %2332 = vmatprep.subr.mxu1 %v2506_v0  ;;  %v1519_v15 = vsel %vm197_vm2, %v1513_v9, %v1517_v14  ;;  %v1822_v9 = vld [vmem:[%s3123_s6 + $0x10] sm:$0xff]  ;;  %v13_v14 = vstv %s3124_s7 }
0x12e8   :  { %2333 = vmatpush3.msra.mxu1 %v2499_v16  ;;  %2313 = vmatmul.mubr.msk.f32.vlgmr.msra.gmra.mxu0 %vm301_vm3, %v1519_v15  ;;  %14 = vst [vmem:[#allocation2] sm:$0x1] %v13_v14 }
0x12e9   :  { %2334 = vmatprep.subr.mxu1 %v2506_v0  ;;  %2353 = vmatprep.mubr.msk.f32.mxu0 %vm2507_vm0, %v2506_v0 }
0x12ea   :  { %2335 = vmatpush3.msra.mxu1 %v2500_v17  ;;  %2346 = vmatpush3.msra.mxu0 %v1823_v47 }
0x12eb   :  { %2336 = vmatprep.subr.mxu1 %v2506_v0  ;;  %2347 = vmatprep.subr.mxu0 %v2506_v0 }
0x12ec   :  { %2337 = vmatpush3.msra.mxu1 %v2501_v18  ;;  %2348 = vmatpush3.msra.mxu0 %v1822_v9 }
0x12ed   :  { %2338 = vmatprep.subr.mxu1 %v2506_v0  ;;  %2349 = vmatprep.subr.mxu0 %v2506_v0 }
0x12ee   :  { %2339 = vmatpush3.msra.mxu1 %v2502_v19  ;;  %2350 = vmatpush3.msra.mxu0 %v1821_v11 }
0x12ef   :  { %2340 = vmatprep.subr.mxu1 %v2506_v0  ;;  %2351 = vmatprep.subr.mxu0 %v2506_v0  ;;  %v1959_v18 = vld [vmem:[#allocation2] ss:$0 sm:$0xff] }
0x12f0   :  { %2341 = vmatpush3.msra.mxu1 %v2503_v20  ;;  %2352 = vmatpush3.msra.mxu0 %v1820_v12 }
0x13a1   :  { %v1685_v23 = vpop.f32.mrf.mxu1 }
0x13a2   :  { %v1689_v48 = vadd.f32 %v1685_v23, %v187_v22 }
0x13a3   :  { %v2325_v24 = vpop.f32.mrf.mxu1 }
0x13a4   :  { %2464 = vtanh.f32 %v1689_v48  ;;  %v1956_v34 = vmul.f32 -1.442695, %v1689_v48 }
0x13a8   :  { %v1589_v25 = vpop.f32.mrf.mxu0 }
0x13a9   :  { %v1590_v26 = vadd.f32 %v2757_v52, %v1589_v25 }
0x13aa   :  { %v2314_v27 = vpop.f32.mrf.mxu0 }
0x13ab   :  { %2466 = vtanh.f32 %v1590_v26  ;;  %v1954_v36 = vmul.f32 -1.442695, %v1590_v26 }
0x13ac   :  { %2468 = vpow2.f32 %v1956_v34 }
0x13ad   :  { %2470 = vpow2.f32 %v1954_v36 }
0x13b1   :  { %v2465_v30 = vpop.eup %2464 }
0x13b2   :  { %1699 = vrot.lane.b32.xlu1 %v2465_v30, %s2508_s22 }
0x13b8   :  { %v2467_v32 = vpop.eup %2466 }
0x13b9   :  { %1602 = vrot.lane.b32.xlu0 %v2467_v32, %s2508_s22  ;;  %v2469_v49 = vpop.eup %2468 }
0x13ba   :  { %v1693_v37 = vadd.f32 1.0, %v2469_v49  ;;  %v2471_v28 = vpop.eup %2470 }
0x13bb   :  { %v1596_v29 = vadd.f32 1.0, %v2471_v28 }
0x13bc   :  { %2472 = vrcp.f32 %v1693_v37 }
0x13bd   :  { %2474 = vrcp.f32 %v1596_v29 }
0x13c9   :  { %v2473_v31 = vpop.eup %2472 }
0x13ca   :  { %v2475_v35 = vpop.eup %2474  ;;  %v1697_v41 = vmul.f32 %v2473_v31, %v3022_v7 }
0x13cb   :  { %v1600_v44 = vmul.f32 %v2475_v35, %v3026_v62 }
0x1424   :  { %v1700_v52 = vpop.permute.xlu1 %1699 }
0x1425   :  { %v1702_v33 = vmul.f32 %v2473_v31, %v1700_v52 }
0x1427   :  { %1704 = vrot.lane.b32.xlu1 %v1702_v33, %s2509_s23 }
0x142b   :  { %v1603_v38 = vpop.permute.xlu0 %1602 }
0x142c   :  { %v1605_v45 = vmul.f32 %v2475_v35, %v1603_v38 }
0x142e   :  { %1607 = vrot.lane.b32.xlu0 %v1605_v45, %s2509_s23 }
0x1499   :  { %v1705_v42 = vpop.permute.xlu1 %1704 }
0x149a   :  { %v1707_v43 = vadd.f32 %v1705_v42, %v1697_v41 }
0x149c   :  { %2476 = vtanh.f32 %v1707_v43 }
0x14a0   :  { %v1608_v39 = vpop.permute.xlu0 %1607 }
0x14a1   :  { %v1610_v50 = vadd.f32 %v1608_v39, %v1600_v44 }
0x14a3   :  { %2478 = vtanh.f32 %v1610_v50 }
0x14a9   :  { %v2477_v40 = vpop.eup %2476 }
0x14aa   :  { %1710 = vrot.lane.b32.xlu1 %v2477_v40, %s2508_s22 }
0x14b0   :  { %v2479_v53 = vpop.eup %2478 }
0x14b1   :  { %1613 = vrot.lane.b32.xlu0 %v2479_v53, %s2508_s22 }
0x151c   :  { %v1711_v10 = vpop.permute.xlu1 %1710 }
0x151d   :  { %v1713_v51 = vmul.f32 %v2473_v31, %v1711_v10 }
0x151f   :  { %1715 = vrot.lane.b32.xlu0 %v1713_v51, %s2509_s23 }
0x1523   :  { %v1614_v54 = vpop.permute.xlu0 %1613 }
0x1524   :  { %v1616_v55 = vmul.f32 %v2475_v35, %v1614_v54 }
0x1526   :  { %1719 = vrot.lane.b32.xlu1 %v1616_v55, %s2508_s22 }
0x1591   :  { %v1716_v46 = vpop.permute.xlu0 %1715 }
0x1598   :  { %v1720_v56 = vpop.permute.xlu1 %1719 }
0x1599   :  { %v1722_v57 = vsel %vm197_vm2, %v1716_v46, %v1720_v56 }
0x159a   :  { %2343 = vmatmul.mubr.msk.f32.vlgmr.msra.gmra.mxu1 %vm301_vm3, %v1722_v57 }
0x165a   :  { %v1792_v58 = vpop.f32.mrf.mxu1 }
0x165b   :  { %v1793_v60 = vadd.f32 %v2505_v59, %v1792_v58 }
0x165c   :  { %v2344_v2 = vpop.f32.mrf.mxu1 }
0x165d   :  { %2480 = vtanh.f32 %v1793_v60  ;;  %v1958_v7 = vmul.f32 -1.442695, %v1793_v60 }
0x165f   :  { %2482 = vpow2.f32 %v1958_v7 }
0x166a   :  { %v2481_v4 = vpop.eup %2480 }
0x166b   :  { %1805 = vrot.lane.b32.xlu0 %v2481_v4, %s2508_s22 }
0x166c   :  { %v2483_v61 = vpop.eup %2482 }
0x166d   :  { %v1799_v8 = vadd.f32 1.0, %v2483_v61 }
0x166f   :  { %2484 = vrcp.f32 %v1799_v8 }
0x167c   :  { %v2485_v62 = vpop.eup %2484 }
0x167d   :  { %v1803_v3 = vmul.f32 %v2485_v62, %v1610_v50 }
0x16dd   :  { %v1806_v63 = vpop.permute.xlu0 %1805 }
0x16de   :  { %v1808_v1 = vmul.f32 %v2485_v62, %v1806_v63 }
0x16e0   :  { %1810 = vrot.lane.b32.xlu1 %v1808_v1, %s2509_s23 }
0x1752   :  { %v1811_v5 = vpop.permute.xlu1 %1810 }
0x1753   :  { %v1813_v6 = vadd.f32 %v1811_v5, %v1803_v3 }
0x1755   :  { %2486 = vtanh.f32 %v1813_v6 }
0x1762   :  { %v2487_v13 = vpop.eup %2486 }
0x1763   :  { %1816 = vrot.lane.b32.xlu0 %v2487_v13, %s2508_s22 }
0x17d5   :  { %v1817_v15 = vpop.permute.xlu0 %1816 }
0x17d6   :  { %v1819_v16 = vmul.f32 %v2485_v62, %v1817_v15 }
0x17d8   :  { %1832 = vrot.lane.b32.xlu1 %v1819_v16, %s2509_s23 }
0x184a   :  { %v1833_v17 = vpop.permute.xlu1 %1832 }
0x184b   :  { %2354 = vmatmul.mubr.msk.f32.vlgmr.msra.gmra.mxu0 %vm197_vm2, %v1833_v17 }
0x190b   :  { %v1902_v19 = vpop.f32.mrf.mxu0 }
0x190c   :  { %v1903_v20 = vadd.f32 %v1959_v18, %v1902_v19 }
0x190d   :  { %v2355_v0 = vpop.f32.mrf.mxu0 }
0x190e   :  { %v1961_v21 = vmul.f32 -1.442695, %v1903_v20 }
0x1910   :  { %2488 = vpow2.f32 %v1961_v21 }
0x191d   :  { %v2489_v22 = vpop.eup %2488 }
0x191e   :  { %v1909_v23 = vadd.f32 1.0, %v2489_v22 }
0x1920   :  { %2490 = vrcp.f32 %v1909_v23 }
0x192d   :  { %v2491_v48 = vpop.eup %2490 }
0x192e   :  { %1913 = vst.msk [vmem:[%s3125_s8] sm:$0xff] %vm1912_vm4, %v2491_v48 }

</bundles_post_ra>
